<compile_context>
chip_gen: v6e
topology: v6e:2x2x1
jax: 0.10.0
libtpu: 0.0.40
codegen_flags: <defaults>
</compile_context>

<pallas_src>
import math
import functools

import jax
import jax.numpy as jnp
from jax import lax
from jax.experimental import pallas as pl
from jax.experimental.pallas import tpu as pltpu


def _layernorm(z, g, b, eps=1e-6):
    mu = jnp.mean(z, axis=-1, keepdims=True)
    d = z - mu
    var = jnp.mean(d * d, axis=-1, keepdims=True)
    return d * lax.rsqrt(var + eps) * g + b


def _to_heads(t, bt, n, h, dh):
    # (bt*n, h*dh) -> (bt*h, n, dh).  For dh < 128 this is a cross-lane relayout
    # (XLU); TODO(synk): for models with dh >= 128 this becomes tile-aligned and cheap.
    t = t.reshape(bt, n, h, dh)
    t = jnp.transpose(t, (0, 2, 1, 3))
    return t.reshape(bt * h, n, dh)


def block_kernel(x_ref, y_ref,
                 ln1_g_ref, ln1_b_ref, ln2_g_ref, ln2_b_ref,
                 wq_ref, bq_ref, wkv_ref, bkv_ref,
                 wo_ref, bo_ref,
                 w1_ref, b1_ref, w2_ref, b2_ref,
                 out_ref,
                 kg_sc, vg_sc,
                 *, num_heads):
    bt, tq, D = x_ref.shape
    _, Ny, _ = y_ref.shape
    H = num_heads
    dh = D // H
    bf16 = jnp.bfloat16
    f32 = jnp.float32

    qi = pl.program_id(1)

    # K/V depend only on the batch block: compute once per batch block (first
    # query tile), cache in VMEM scratch in head layout, reuse for all query
    # tiles.  Keeps all y-side f32 intermediates' live range inside this branch.
    @pl.when(qi == 0)
    def _():
        y = y_ref[...].reshape(bt * Ny, D).astype(f32)
        yn = _layernorm(y, ln1_g_ref[...], ln1_b_ref[...])
        kv = jnp.dot(yn.astype(bf16), wkv_ref[...],
                     preferred_element_type=f32) + bkv_ref[...]
        kg_sc[...] = _to_heads(kv[:, :D], bt, Ny, H, dh).astype(bf16)
        vg_sc[...] = _to_heads(kv[:, D:], bt, Ny, H, dh).astype(bf16)

    # ---- query-side path (per (batch block, query tile)) ----
    x = x_ref[...].reshape(bt * tq, D).astype(f32)
    xn = _layernorm(x, ln1_g_ref[...], ln1_b_ref[...])

    # 1/sqrt(dh) is pre-folded into wq / bq host-side.
    q = jnp.dot(xn.astype(bf16), wq_ref[...],
                preferred_element_type=f32) + bq_ref[...]
    qg = _to_heads(q, bt, tq, H, dh).astype(bf16)

    # Batched multi-head attention: one dot_general per phase, batch dim = bt*H.
    s = lax.dot_general(qg, kg_sc[...],
                        dimension_numbers=(((2,), (2,)), ((0,), (0,))),
                        preferred_element_type=f32)        # (bt*H, tq, Ny)
    s = s - jnp.max(s, axis=-1, keepdims=True)
    p = jnp.exp(s)
    p = p * pl.reciprocal(jnp.sum(p, axis=-1, keepdims=True), approx=True)
    # attn_dropout: identity (eval mode)

    ctx = lax.dot_general(p.astype(bf16), vg_sc[...],
                          dimension_numbers=(((2,), (1,)), ((0,), (0,))),
                          preferred_element_type=f32)      # (bt*H, tq, dh)
    ctx = ctx.reshape(bt, H, tq, dh)
    ctx = jnp.transpose(ctx, (0, 2, 1, 3)).reshape(bt * tq, D)

    attn_out = jnp.dot(ctx.astype(bf16), wo_ref[...],
                       preferred_element_type=f32) + bo_ref[...]
    # proj_dropout: identity (eval mode)

    # First residual.
    h1 = x + attn_out

    # ffn_norm + MLP (GELU in tanh/EUP form, f32 vector math).
    hn = _layernorm(h1, ln2_g_ref[...], ln2_b_ref[...])
    f1 = jnp.dot(hn.astype(bf16), w1_ref[...],
                 preferred_element_type=f32) + b1_ref[...]
    f1 = jax.nn.gelu(f1, approximate=True)
    f2 = jnp.dot(f1.astype(bf16), w2_ref[...],
                 preferred_element_type=f32) + b2_ref[...]
    # mlp dropout: identity (eval mode)

    # TODO(synk): if D % 128 != 0 (toy configs), flatten the out block to
    # (bt, tq*D) in the wrapper for lane-dense (unmasked) stores.
    out_ref[...] = (h1 + f2).reshape(bt, tq, D).astype(out_ref.dtype)


def _pick_seq_tile(N, target=256):
    """Largest divisor of N that is <= target and sublane-friendly (mult. of 8 or full)."""
    cands = [t for t in range(1, N + 1)
             if N % t == 0 and (t == N or t % 8 == 0) and t <= target]
    return max(cands) if cands else N


def _pick_batch_tile(B, rows_per_batch, target_rows=512):
    """Largest divisor of B with <= target_rows rows per step, capped at B//2 so
    the parallel grid axis has >= 2 steps (keeps v7x's 2 TensorCores busy)."""
    cap = max(1, B // 2)
    best = 1
    for bt in range(1, cap + 1):
        if B % bt == 0 and bt * rows_per_batch <= target_rows:
            best = bt
    return best


def _vmem_capacity_bytes():
    try:
        info = pltpu.get_tpu_info()
        for name in ("vmem_capacity_bytes", "vmem_bytes", "vmem_size_bytes"):
            cap = getattr(info, name, None)
            if cap:
                return int(cap)
    except Exception:
        pass
    return 64 * 1024 * 1024   # conservative fallback: v7x per-TensorCore VMEM


def _vmem_limit_bytes(bt, tq, Ny, D, M, H):
    f32b, bf16b = 4, 2
    dh = D // H
    weights = (D * D + D * 2 * D + D * D + D * M + M * D) * bf16b  # single-buffered
    biases = (9 * D + M) * f32b
    io = 2 * (bt * tq * D + bt * Ny * D + bt * tq * D) * f32b      # double-buffered x/y/out
    kv_scratch = 2 * bt * H * Ny * dh * bf16b
    rows = bt * tq
    live = (6 * rows * D + rows * M + 2 * bt * H * tq * Ny + 3 * bt * Ny * D) * f32b
    est = weights + biases + io + kv_scratch + live
    cap = _vmem_capacity_bytes()
    # Request what we need (x1.5 headroom for compiler scratch), but never more
    # than ~80% of physical VMEM — leaving headroom matters most on v7x (64 MiB).
    return int(min(0.8 * cap, max(1.5 * est, 32 * 1024 * 1024)))


def prepare_params(params, num_heads):
    """One-time host-side weight prep (hoisted out of the per-call forward path):
    fold 1/sqrt(dh) into the query projection, fuse [K|V] weights, and cast MXU
    operand weights to bf16 (accumulation stays f32 inside the kernel)."""
    D = params["wq"].shape[0]
    dh = D // num_heads
    scale = 1.0 / math.sqrt(dh)
    bf16, f32 = jnp.bfloat16, jnp.float32
    # TODO(synk): on v7x, optionally store the five large weights in fp8 with
    # per-output-channel scales folded into the bias / a post-matmul multiply.
    return {
        "ln1_g": params["ln1_g"].astype(f32), "ln1_b": params["ln1_b"].astype(f32),
        "ln2_g": params["ln2_g"].astype(f32), "ln2_b": params["ln2_b"].astype(f32),
        "wq": (params["wq"] * scale).astype(bf16),
        "bq": (params["bq"] * scale).astype(f32),
        "wkv": jnp.concatenate([params["wk"], params["wv"]], axis=1).astype(bf16),
        "bkv": jnp.concatenate([params["bk"], params["bv"]], axis=1).astype(f32),
        "wo": params["wo"].astype(bf16), "bo": params["bo"].astype(f32),
        "w1": params["w1"].astype(bf16), "b1": params["b1"].astype(f32),
        "w2": params["w2"].astype(bf16), "b2": params["b2"].astype(f32),
    }


def block_forward(x, y, prepped, num_heads, *,
                  batch_tile=None, q_tile=None,
                  target_rows=512, q_tile_target=256):
    B, Nx, D = x.shape
    By, Ny, Dy = y.shape
    assert By == B and Dy == D and D % num_heads == 0
    M = prepped["w1"].shape[1]
    dh = D // num_heads

    tq = q_tile if q_tile is not None else _pick_seq_tile(Nx, q_tile_target)
    assert Nx % tq == 0
    bt = (batch_tile if batch_tile is not None
          else _pick_batch_tile(B, tq + Ny, target_rows))
    assert B % bt == 0

    grid = (B // bt, Nx // tq)

    def const_spec(shape):
        # Constant block index across the grid => Pallas DMAs the weight once;
        # Buffered(1) drops the never-used second buffer (halves weight VMEM).
        return pl.BlockSpec(shape, lambda b, q: (0,) * len(shape),
                            pipeline_mode=pl.Buffered(1))

    in_specs = [
        pl.BlockSpec((bt, tq, D), lambda b, q: (b, q, 0)),   # x (query tile)
        pl.BlockSpec((bt, Ny, D), lambda b, q: (b, 0, 0)),   # y (full K/V sequence)
        const_spec((1, D)), const_spec((1, D)),              # ln1 gamma/beta
        const_spec((1, D)), const_spec((1, D)),              # ln2 gamma/beta
        const_spec((D, D)), const_spec((1, D)),              # wq (pre-scaled), bq
        const_spec((D, 2 * D)), const_spec((1, 2 * D)),      # [wk|wv], [bk|bv]
        const_spec((D, D)), const_spec((1, D)),              # wo, bo
        const_spec((D, M)), const_spec((1, M)),              # w1, b1
        const_spec((M, D)), const_spec((1, D)),              # w2, b2
    ]

    kernel = functools.partial(block_kernel, num_heads=num_heads)

    return pl.pallas_call(
        kernel,
        out_shape=jax.ShapeDtypeStruct((B, Nx, D), x.dtype),
        grid_spec=pltpu.PrefetchScalarGridSpec(
            num_scalar_prefetch=0,
            grid=grid,
            in_specs=in_specs,
            out_specs=pl.BlockSpec((bt, tq, D), lambda b, q: (b, q, 0)),
            scratch_shapes=[
                pltpu.VMEM((bt * num_heads, Ny, dh), jnp.bfloat16),  # cached K (head layout)
                pltpu.VMEM((bt * num_heads, Ny, dh), jnp.bfloat16),  # cached V (head layout)
            ]),
        compiler_params=pltpu.CompilerParams(
            # batch-block axis shards across cores (v7x megacore); the query-tile
            # axis carries the K/V scratch, so it must stay ordered ("arbitrary").
            dimension_semantics=("parallel", "arbitrary"),
            vmem_limit_bytes=_vmem_limit_bytes(bt, tq, Ny, D, M, num_heads)),
    )(x, y,
      prepped["ln1_g"], prepped["ln1_b"], prepped["ln2_g"], prepped["ln2_b"],
      prepped["wq"], prepped["bq"], prepped["wkv"], prepped["bkv"],
      prepped["wo"], prepped["bo"],
      prepped["w1"], prepped["b1"], prepped["w2"], prepped["b2"])


def block_reference(x, y, params, num_heads):
    """Plain-JAX f32 reference with the original (torch) semantics, for verification."""
    D = x.shape[-1]
    dh = D // num_heads

    def ln(z, g, b):
        mu = jnp.mean(z, -1, keepdims=True)
        var = jnp.mean((z - mu) ** 2, -1, keepdims=True)
        return (z - mu) / jnp.sqrt(var + 1e-6) * g + b

    xn = ln(x, params["ln1_g"], params["ln1_b"])
    yn = ln(y, params["ln1_g"], params["ln1_b"])
    q = xn @ params["wq"] + params["bq"]
    k = yn @ params["wk"] + params["bk"]
    v = yn @ params["wv"] + params["bv"]

    def split(t):
        B, N, _ = t.shape
        return t.reshape(B, N, num_heads, dh).transpose(0, 2, 1, 3)

    qh, kh, vh = split(q), split(k), split(v)
    s = jnp.einsum("bhqd,bhkd->bhqk", qh, kh) / math.sqrt(dh)
    p = jax.nn.softmax(s, axis=-1)
    ctx = jnp.einsum("bhqk,bhkd->bhqd", p, vh)
    ctx = ctx.transpose(0, 2, 1, 3).reshape(x.shape)
    attn_out = ctx @ params["wo"] + params["bo"]

    h1 = x + attn_out
    hn = ln(h1, params["ln2_g"], params["ln2_b"])
    f = jax.nn.gelu(hn @ params["w1"] + params["b1"], approximate=False)
    f = f @ params["w2"] + params["b2"]
    return h1 + f


def make_params(key, D, M):
    ks = jax.random.split(key, 12)

    def w(k, shape, scale):
        return jax.random.normal(k, shape, jnp.float32) * scale

    return {
        "ln1_g": jnp.ones((1, D), jnp.float32),
        "ln1_b": jnp.zeros((1, D), jnp.float32),
        "ln2_g": jnp.ones((1, D), jnp.float32),
        "ln2_b": jnp.zeros((1, D), jnp.float32),
        "wq": w(ks[0], (D, D), 0.05), "bq": w(ks[1], (1, D), 0.01),
        "wk": w(ks[2], (D, D), 0.05), "bk": w(ks[3], (1, D), 0.01),
        "wv": w(ks[4], (D, D), 0.05), "bv": w(ks[5], (1, D), 0.01),
        "wo": w(ks[6], (D, D), 0.05), "bo": w(ks[7], (1, D), 0.01),
        # Mlp._init_weights: xavier_uniform weights, tiny-normal biases
        "w1": w(ks[8], (D, M), math.sqrt(2.0 / (D + M))),
        "b1": w(ks[9], (1, M), 1e-6),
        "w2": w(ks[10], (M, D), math.sqrt(2.0 / (D + M))),
        "b2": w(ks[11], (1, D), 1e-6),
    }


if __name__ == "__main__":
    B, Nx, Ny, D, H, M = 2, 16, 16, 32, 4, 64

    key = jax.random.PRNGKey(0)
    kx, ky, kp = jax.random.split(key, 3)
    x = jax.random.normal(kx, (B, Nx, D), jnp.float32)
    y = jax.random.normal(ky, (B, Ny, D), jnp.float32)
    params = make_params(kp, D, M)

    prepped = prepare_params(params, num_heads=H)   # one-time weight prep
    out = block_forward(x, y, prepped, num_heads=H)
    out = jax.block_until_ready(out)

    ref = block_reference(x, y, params, num_heads=H)
    assert out.shape == (B, Nx, D)
    max_err = float(jnp.max(jnp.abs(out - ref)))
    # Kernel uses bf16 MXU operands + tanh-GELU + approx reciprocal; compare
    # loosely against the f32 / erf-GELU reference.
    assert jnp.allclose(out, ref, rtol=5e-2, atol=1e-1), \
        f"mismatch vs reference (max abs err {max_err})"

    print("KERNEL_OK")
</pallas_src>

<mosaic_0001>
module attributes {stable_mosaic.version = 11 : i64} {
  func.func @block_kernel(%arg0: i32, %arg1: i32, %arg2: memref<1x16x32xf32, #tpu.memory_space<vmem>>, %arg3: memref<1x16x32xf32, #tpu.memory_space<vmem>>, %arg4: memref<1x32xf32, #tpu.memory_space<vmem>>, %arg5: memref<1x32xf32, #tpu.memory_space<vmem>>, %arg6: memref<1x32xf32, #tpu.memory_space<vmem>>, %arg7: memref<1x32xf32, #tpu.memory_space<vmem>>, %arg8: memref<32x32xbf16, #tpu.memory_space<vmem>>, %arg9: memref<1x32xf32, #tpu.memory_space<vmem>>, %arg10: memref<32x64xbf16, #tpu.memory_space<vmem>>, %arg11: memref<1x64xf32, #tpu.memory_space<vmem>>, %arg12: memref<32x32xbf16, #tpu.memory_space<vmem>>, %arg13: memref<1x32xf32, #tpu.memory_space<vmem>>, %arg14: memref<32x64xbf16, #tpu.memory_space<vmem>>, %arg15: memref<1x64xf32, #tpu.memory_space<vmem>>, %arg16: memref<64x32xbf16, #tpu.memory_space<vmem>>, %arg17: memref<1x32xf32, #tpu.memory_space<vmem>>, %arg18: memref<1x16x32xf32, #tpu.memory_space<vmem>>, %arg19: memref<4x16x8xbf16, #tpu.memory_space<vmem>>, %arg20: memref<4x16x8xbf16, #tpu.memory_space<vmem>>) attributes {dimension_semantics = [#tpu.dimension_semantics<parallel>, #tpu.dimension_semantics<arbitrary>], iteration_bounds = array<i64: 2, 1>, scalar_prefetch = 0 : i64, scratch_operands = 2 : i64, tpu.core_type = #tpu.core_type<tc>, window_params = [{transform_indices = @transform_0, window_bounds = array<i64: 1, 16, 32>}, {transform_indices = @transform_1, window_bounds = array<i64: 1, 16, 32>}, {pipeline_mode = #tpu.pipeline_mode<synchronous>, transform_indices = @transform_2, window_bounds = array<i64: 1, 32>}, {pipeline_mode = #tpu.pipeline_mode<synchronous>, transform_indices = @transform_3, window_bounds = array<i64: 1, 32>}, {pipeline_mode = #tpu.pipeline_mode<synchronous>, transform_indices = @transform_4, window_bounds = array<i64: 1, 32>}, {pipeline_mode = #tpu.pipeline_mode<synchronous>, transform_indices = @transform_5, window_bounds = array<i64: 1, 32>}, {pipeline_mode = #tpu.pipeline_mode<synchronous>, transform_indices = @transform_6, window_bounds = array<i64: 32, 32>}, {pipeline_mode = #tpu.pipeline_mode<synchronous>, transform_indices = @transform_7, window_bounds = array<i64: 1, 32>}, {pipeline_mode = #tpu.pipeline_mode<synchronous>, transform_indices = @transform_8, window_bounds = array<i64: 32, 64>}, {pipeline_mode = #tpu.pipeline_mode<synchronous>, transform_indices = @transform_9, window_bounds = array<i64: 1, 64>}, {pipeline_mode = #tpu.pipeline_mode<synchronous>, transform_indices = @transform_10, window_bounds = array<i64: 32, 32>}, {pipeline_mode = #tpu.pipeline_mode<synchronous>, transform_indices = @transform_11, window_bounds = array<i64: 1, 32>}, {pipeline_mode = #tpu.pipeline_mode<synchronous>, transform_indices = @transform_12, window_bounds = array<i64: 32, 64>}, {pipeline_mode = #tpu.pipeline_mode<synchronous>, transform_indices = @transform_13, window_bounds = array<i64: 1, 64>}, {pipeline_mode = #tpu.pipeline_mode<synchronous>, transform_indices = @transform_14, window_bounds = array<i64: 64, 32>}, {pipeline_mode = #tpu.pipeline_mode<synchronous>, transform_indices = @transform_15, window_bounds = array<i64: 1, 32>}, {transform_indices = @transform_16, window_bounds = array<i64: 1, 16, 32>}]} {
    %c0_i32 = arith.constant 0 : i32
    %0 = arith.cmpi eq, %arg1, %c0_i32 : i32
    %1 = arith.extui %0 : i1 to i32
    %c0_i32_0 = arith.constant 0 : i32
    %2 = arith.cmpi ne, %1, %c0_i32_0 : i32
    scf.if %2 {
      %c0_57 = arith.constant 0 : index
      %c0_58 = arith.constant 0 : index
      %c0_59 = arith.constant 0 : index
      %112 = vector.load %arg3[%c0_57, %c0_58, %c0_59] : memref<1x16x32xf32, #tpu.memory_space<vmem>>, vector<1x16x32xf32>
      %113 = vector.shape_cast %112 : vector<1x16x32xf32> to vector<16x32xf32>
      %c0_60 = arith.constant 0 : index
      %c0_61 = arith.constant 0 : index
      %114 = vector.load %arg4[%c0_60, %c0_61] : memref<1x32xf32, #tpu.memory_space<vmem>>, vector<1x32xf32>
      %c0_62 = arith.constant 0 : index
      %c0_63 = arith.constant 0 : index
      %115 = vector.load %arg5[%c0_62, %c0_63] : memref<1x32xf32, #tpu.memory_space<vmem>>, vector<1x32xf32>
      %cst_64 = arith.constant dense<0.000000e+00> : vector<16xf32>
      %116 = vector.multi_reduction <add>, %113, %cst_64 [1] : vector<16x32xf32> to vector<16xf32>
      %117 = vector.shape_cast %116 : vector<16xf32> to vector<16x1xf32>
      %cst_65 = arith.constant 3.200000e+01 : f32
      %118 = vector.broadcast %cst_65 : f32 to vector<16x1xf32>
      %119 = arith.divf %117, %118 : vector<16x1xf32>
      %120 = vector.broadcast %119 : vector<16x1xf32> to vector<16x32xf32>
      %121 = arith.subf %113, %120 : vector<16x32xf32>
      %122 = arith.mulf %121, %121 : vector<16x32xf32>
      %cst_66 = arith.constant dense<0.000000e+00> : vector<16xf32>
      %123 = vector.multi_reduction <add>, %122, %cst_66 [1] : vector<16x32xf32> to vector<16xf32>
      %124 = vector.shape_cast %123 : vector<16xf32> to vector<16x1xf32>
      %cst_67 = arith.constant 3.200000e+01 : f32
      %125 = vector.broadcast %cst_67 : f32 to vector<16x1xf32>
      %126 = arith.divf %124, %125 : vector<16x1xf32>
      %cst_68 = arith.constant 9.99999997E-7 : f32
      %127 = vector.broadcast %cst_68 : f32 to vector<16x1xf32>
      %128 = arith.addf %126, %127 : vector<16x1xf32>
      %129 = math.rsqrt %128 : vector<16x1xf32>
      %130 = vector.broadcast %129 : vector<16x1xf32> to vector<16x32xf32>
      %131 = arith.mulf %121, %130 : vector<16x32xf32>
      %132 = vector.broadcast %114 : vector<1x32xf32> to vector<16x32xf32>
      %133 = arith.mulf %131, %132 : vector<16x32xf32>
      %134 = vector.broadcast %115 : vector<1x32xf32> to vector<16x32xf32>
      %135 = arith.addf %133, %134 : vector<16x32xf32>
      %136 = arith.truncf %135 : vector<16x32xf32> to vector<16x32xbf16>
      %c0_69 = arith.constant 0 : index
      %c0_70 = arith.constant 0 : index
      %137 = vector.load %arg10[%c0_69, %c0_70] : memref<32x64xbf16, #tpu.memory_space<vmem>>, vector<32x64xbf16>
      %cst_71 = arith.constant dense<0.000000e+00> : vector<16x64xf32>
      %138 = tpu.matmul %136, %137, %cst_71 {dimension_numbers = #tpu.dot_dimension_numbers<[1], [0], [0], [1], [0, 0, 1, 1], [], []>} : vector<16x32xbf16>, vector<32x64xbf16>, vector<16x64xf32> -> vector<16x64xf32>
      %c0_72 = arith.constant 0 : index
      %c0_73 = arith.constant 0 : index
      %139 = vector.load %arg11[%c0_72, %c0_73] : memref<1x64xf32, #tpu.memory_space<vmem>>, vector<1x64xf32>
      %140 = vector.broadcast %139 : vector<1x64xf32> to vector<16x64xf32>
      %141 = arith.addf %138, %140 : vector<16x64xf32>
      %142 = vector.extract_strided_slice %141 {offsets = [0, 0], sizes = [16, 32], strides = [1, 1]} : vector<16x64xf32> to vector<16x32xf32>
      %143 = vector.shape_cast %142 : vector<16x32xf32> to vector<1x16x4x8xf32>
      %144 = tpu.transpose %143, [0, 2, 1, 3] : vector<1x16x4x8xf32> -> vector<1x4x16x8xf32>
      %145 = vector.shape_cast %144 : vector<1x4x16x8xf32> to vector<4x16x8xf32>
      %146 = arith.truncf %145 : vector<4x16x8xf32> to vector<4x16x8xbf16>
      %c0_74 = arith.constant 0 : index
      %c0_75 = arith.constant 0 : index
      %c0_76 = arith.constant 0 : index
      %147 = vector.load %arg19[%c0_74, %c0_75, %c0_76] : memref<4x16x8xbf16, #tpu.memory_space<vmem>>, vector<4x16x8xbf16>
      tpu.vector_store %arg19[%c0_74, %c0_75, %c0_76], %146 {strides = array<i32>} : memref<4x16x8xbf16, #tpu.memory_space<vmem>>, vector<4x16x8xbf16>,
      %148 = vector.extract_strided_slice %141 {offsets = [0, 32], sizes = [16, 32], strides = [1, 1]} : vector<16x64xf32> to vector<16x32xf32>
      %149 = vector.shape_cast %148 : vector<16x32xf32> to vector<1x16x4x8xf32>
      %150 = tpu.transpose %149, [0, 2, 1, 3] : vector<1x16x4x8xf32> -> vector<1x4x16x8xf32>
      %151 = vector.shape_cast %150 : vector<1x4x16x8xf32> to vector<4x16x8xf32>
      %152 = arith.truncf %151 : vector<4x16x8xf32> to vector<4x16x8xbf16>
      %c0_77 = arith.constant 0 : index
      %c0_78 = arith.constant 0 : index
      %c0_79 = arith.constant 0 : index
      %153 = vector.load %arg20[%c0_77, %c0_78, %c0_79] : memref<4x16x8xbf16, #tpu.memory_space<vmem>>, vector<4x16x8xbf16>
      tpu.vector_store %arg20[%c0_77, %c0_78, %c0_79], %152 {strides = array<i32>} : memref<4x16x8xbf16, #tpu.memory_space<vmem>>, vector<4x16x8xbf16>,
    } else {
    }
    %c0 = arith.constant 0 : index
    %c0_1 = arith.constant 0 : index
    %c0_2 = arith.constant 0 : index
    %3 = vector.load %arg2[%c0, %c0_1, %c0_2] : memref<1x16x32xf32, #tpu.memory_space<vmem>>, vector<1x16x32xf32>
    %4 = vector.shape_cast %3 : vector<1x16x32xf32> to vector<16x32xf32>
    %c0_3 = arith.constant 0 : index
    %c0_4 = arith.constant 0 : index
    %5 = vector.load %arg4[%c0_3, %c0_4] : memref<1x32xf32, #tpu.memory_space<vmem>>, vector<1x32xf32>
    %c0_5 = arith.constant 0 : index
    %c0_6 = arith.constant 0 : index
    %6 = vector.load %arg5[%c0_5, %c0_6] : memref<1x32xf32, #tpu.memory_space<vmem>>, vector<1x32xf32>
    %cst = arith.constant dense<0.000000e+00> : vector<16xf32>
    %7 = vector.multi_reduction <add>, %4, %cst [1] : vector<16x32xf32> to vector<16xf32>
    %8 = vector.shape_cast %7 : vector<16xf32> to vector<16x1xf32>
    %cst_7 = arith.constant 3.200000e+01 : f32
    %9 = vector.broadcast %cst_7 : f32 to vector<16x1xf32>
    %10 = arith.divf %8, %9 : vector<16x1xf32>
    %11 = vector.broadcast %10 : vector<16x1xf32> to vector<16x32xf32>
    %12 = arith.subf %4, %11 : vector<16x32xf32>
    %13 = arith.mulf %12, %12 : vector<16x32xf32>
    %cst_8 = arith.constant dense<0.000000e+00> : vector<16xf32>
    %14 = vector.multi_reduction <add>, %13, %cst_8 [1] : vector<16x32xf32> to vector<16xf32>
    %15 = vector.shape_cast %14 : vector<16xf32> to vector<16x1xf32>
    %cst_9 = arith.constant 3.200000e+01 : f32
    %16 = vector.broadcast %cst_9 : f32 to vector<16x1xf32>
    %17 = arith.divf %15, %16 : vector<16x1xf32>
    %cst_10 = arith.constant 9.99999997E-7 : f32
    %18 = vector.broadcast %cst_10 : f32 to vector<16x1xf32>
    %19 = arith.addf %17, %18 : vector<16x1xf32>
    %20 = math.rsqrt %19 : vector<16x1xf32>
    %21 = vector.broadcast %20 : vector<16x1xf32> to vector<16x32xf32>
    %22 = arith.mulf %12, %21 : vector<16x32xf32>
    %23 = vector.broadcast %5 : vector<1x32xf32> to vector<16x32xf32>
    %24 = arith.mulf %22, %23 : vector<16x32xf32>
    %25 = vector.broadcast %6 : vector<1x32xf32> to vector<16x32xf32>
    %26 = arith.addf %24, %25 : vector<16x32xf32>
    %27 = arith.truncf %26 : vector<16x32xf32> to vector<16x32xbf16>
    %c0_11 = arith.constant 0 : index
    %c0_12 = arith.constant 0 : index
    %28 = vector.load %arg8[%c0_11, %c0_12] : memref<32x32xbf16, #tpu.memory_space<vmem>>, vector<32x32xbf16>
    %cst_13 = arith.constant dense<0.000000e+00> : vector<16x32xf32>
    %29 = tpu.matmul %27, %28, %cst_13 {dimension_numbers = #tpu.dot_dimension_numbers<[1], [0], [0], [1], [0, 0, 1, 1], [], []>} : vector<16x32xbf16>, vector<32x32xbf16>, vector<16x32xf32> -> vector<16x32xf32>
    %c0_14 = arith.constant 0 : index
    %c0_15 = arith.constant 0 : index
    %30 = vector.load %arg9[%c0_14, %c0_15] : memref<1x32xf32, #tpu.memory_space<vmem>>, vector<1x32xf32>
    %31 = vector.broadcast %30 : vector<1x32xf32> to vector<16x32xf32>
    %32 = arith.addf %29, %31 : vector<16x32xf32>
    %33 = vector.shape_cast %32 : vector<16x32xf32> to vector<1x16x4x8xf32>
    %34 = tpu.transpose %33, [0, 2, 1, 3] : vector<1x16x4x8xf32> -> vector<1x4x16x8xf32>
    %35 = vector.shape_cast %34 : vector<1x4x16x8xf32> to vector<4x16x8xf32>
    %36 = arith.truncf %35 : vector<4x16x8xf32> to vector<4x16x8xbf16>
    %c0_16 = arith.constant 0 : index
    %c0_17 = arith.constant 0 : index
    %c0_18 = arith.constant 0 : index
    %37 = vector.load %arg19[%c0_16, %c0_17, %c0_18] : memref<4x16x8xbf16, #tpu.memory_space<vmem>>, vector<4x16x8xbf16>
    %cst_19 = arith.constant dense<0.000000e+00> : vector<4x16x16xf32>
    %38 = tpu.matmul %36, %37, %cst_19 {dimension_numbers = #tpu.dot_dimension_numbers<[2], [2], [1], [1], [0, 0, 0, 1, 1, 1], [0], [0]>} : vector<4x16x8xbf16>, vector<4x16x8xbf16>, vector<4x16x16xf32> -> vector<4x16x16xf32>
    %cst_20 = arith.constant dense<0xFF800000> : vector<4x16xf32>
    %39 = vector.multi_reduction <maximumf>, %38, %cst_20 [2] : vector<4x16x16xf32> to vector<4x16xf32>
    %40 = vector.shape_cast %39 : vector<4x16xf32> to vector<4x16x1xf32>
    %41 = vector.broadcast %40 : vector<4x16x1xf32> to vector<4x16x16xf32>
    %42 = arith.subf %38, %41 : vector<4x16x16xf32>
    %43 = math.exp %42 : vector<4x16x16xf32>
    %cst_21 = arith.constant dense<0.000000e+00> : vector<4x16xf32>
    %44 = vector.multi_reduction <add>, %43, %cst_21 [2] : vector<4x16x16xf32> to vector<4x16xf32>
    %45 = vector.shape_cast %44 : vector<4x16xf32> to vector<4x16x1xf32>
    %46 = tpu.reciprocal %45 {approx = true} : vector<4x16x1xf32> -> vector<4x16x1xf32>
    %47 = vector.broadcast %46 : vector<4x16x1xf32> to vector<4x16x16xf32>
    %48 = arith.mulf %43, %47 : vector<4x16x16xf32>
    %49 = arith.truncf %48 : vector<4x16x16xf32> to vector<4x16x16xbf16>
    %c0_22 = arith.constant 0 : index
    %c0_23 = arith.constant 0 : index
    %c0_24 = arith.constant 0 : index
    %50 = vector.load %arg20[%c0_22, %c0_23, %c0_24] : memref<4x16x8xbf16, #tpu.memory_space<vmem>>, vector<4x16x8xbf16>
    %cst_25 = arith.constant dense<0.000000e+00> : vector<4x16x8xf32>
    %51 = tpu.matmul %49, %50, %cst_25 {dimension_numbers = #tpu.dot_dimension_numbers<[2], [1], [1], [2], [0, 0, 0, 1, 1, 2], [0], [0]>} : vector<4x16x16xbf16>, vector<4x16x8xbf16>, vector<4x16x8xf32> -> vector<4x16x8xf32>
    %52 = vector.shape_cast %51 : vector<4x16x8xf32> to vector<1x4x16x8xf32>
    %53 = tpu.transpose %52, [0, 2, 1, 3] : vector<1x4x16x8xf32> -> vector<1x16x4x8xf32>
    %54 = vector.shape_cast %53 : vector<1x16x4x8xf32> to vector<16x32xf32>
    %55 = arith.truncf %54 : vector<16x32xf32> to vector<16x32xbf16>
    %c0_26 = arith.constant 0 : index
    %c0_27 = arith.constant 0 : index
    %56 = vector.load %arg12[%c0_26, %c0_27] : memref<32x32xbf16, #tpu.memory_space<vmem>>, vector<32x32xbf16>
    %cst_28 = arith.constant dense<0.000000e+00> : vector<16x32xf32>
    %57 = tpu.matmul %55, %56, %cst_28 {dimension_numbers = #tpu.dot_dimension_numbers<[1], [0], [0], [1], [0, 0, 1, 1], [], []>} : vector<16x32xbf16>, vector<32x32xbf16>, vector<16x32xf32> -> vector<16x32xf32>
    %c0_29 = arith.constant 0 : index
    %c0_30 = arith.constant 0 : index
    %58 = vector.load %arg13[%c0_29, %c0_30] : memref<1x32xf32, #tpu.memory_space<vmem>>, vector<1x32xf32>
    %59 = vector.broadcast %58 : vector<1x32xf32> to vector<16x32xf32>
    %60 = arith.addf %57, %59 : vector<16x32xf32>
    %61 = arith.addf %4, %60 : vector<16x32xf32>
    %c0_31 = arith.constant 0 : index
    %c0_32 = arith.constant 0 : index
    %62 = vector.load %arg6[%c0_31, %c0_32] : memref<1x32xf32, #tpu.memory_space<vmem>>, vector<1x32xf32>
    %c0_33 = arith.constant 0 : index
    %c0_34 = arith.constant 0 : index
    %63 = vector.load %arg7[%c0_33, %c0_34] : memref<1x32xf32, #tpu.memory_space<vmem>>, vector<1x32xf32>
    %cst_35 = arith.constant dense<0.000000e+00> : vector<16xf32>
    %64 = vector.multi_reduction <add>, %61, %cst_35 [1] : vector<16x32xf32> to vector<16xf32>
    %65 = vector.shape_cast %64 : vector<16xf32> to vector<16x1xf32>
    %cst_36 = arith.constant 3.200000e+01 : f32
    %66 = vector.broadcast %cst_36 : f32 to vector<16x1xf32>
    %67 = arith.divf %65, %66 : vector<16x1xf32>
    %68 = vector.broadcast %67 : vector<16x1xf32> to vector<16x32xf32>
    %69 = arith.subf %61, %68 : vector<16x32xf32>
    %70 = arith.mulf %69, %69 : vector<16x32xf32>
    %cst_37 = arith.constant dense<0.000000e+00> : vector<16xf32>
    %71 = vector.multi_reduction <add>, %70, %cst_37 [1] : vector<16x32xf32> to vector<16xf32>
    %72 = vector.shape_cast %71 : vector<16xf32> to vector<16x1xf32>
    %cst_38 = arith.constant 3.200000e+01 : f32
    %73 = vector.broadcast %cst_38 : f32 to vector<16x1xf32>
    %74 = arith.divf %72, %73 : vector<16x1xf32>
    %cst_39 = arith.constant 9.99999997E-7 : f32
    %75 = vector.broadcast %cst_39 : f32 to vector<16x1xf32>
    %76 = arith.addf %74, %75 : vector<16x1xf32>
    %77 = math.rsqrt %76 : vector<16x1xf32>
    %78 = vector.broadcast %77 : vector<16x1xf32> to vector<16x32xf32>
    %79 = arith.mulf %69, %78 : vector<16x32xf32>
    %80 = vector.broadcast %62 : vector<1x32xf32> to vector<16x32xf32>
    %81 = arith.mulf %79, %80 : vector<16x32xf32>
    %82 = vector.broadcast %63 : vector<1x32xf32> to vector<16x32xf32>
    %83 = arith.addf %81, %82 : vector<16x32xf32>
    %84 = arith.truncf %83 : vector<16x32xf32> to vector<16x32xbf16>
    %c0_40 = arith.constant 0 : index
    %c0_41 = arith.constant 0 : index
    %85 = vector.load %arg14[%c0_40, %c0_41] : memref<32x64xbf16, #tpu.memory_space<vmem>>, vector<32x64xbf16>
    %cst_42 = arith.constant dense<0.000000e+00> : vector<16x64xf32>
    %86 = tpu.matmul %84, %85, %cst_42 {dimension_numbers = #tpu.dot_dimension_numbers<[1], [0], [0], [1], [0, 0, 1, 1], [], []>} : vector<16x32xbf16>, vector<32x64xbf16>, vector<16x64xf32> -> vector<16x64xf32>
    %c0_43 = arith.constant 0 : index
    %c0_44 = arith.constant 0 : index
    %87 = vector.load %arg15[%c0_43, %c0_44] : memref<1x64xf32, #tpu.memory_space<vmem>>, vector<1x64xf32>
    %88 = vector.broadcast %87 : vector<1x64xf32> to vector<16x64xf32>
    %89 = arith.addf %86, %88 : vector<16x64xf32>
    %90 = arith.mulf %89, %89 : vector<16x64xf32>
    %91 = arith.mulf %89, %90 : vector<16x64xf32>
    %cst_45 = arith.constant 4.471500e-02 : f32
    %92 = vector.broadcast %cst_45 : f32 to vector<16x64xf32>
    %93 = arith.mulf %92, %91 : vector<16x64xf32>
    %94 = arith.addf %89, %93 : vector<16x64xf32>
    %cst_46 = arith.constant 0.797884583 : f32
    %95 = vector.broadcast %cst_46 : f32 to vector<16x64xf32>
    %96 = arith.mulf %95, %94 : vector<16x64xf32>
    %97 = math.tanh %96 : vector<16x64xf32>
    %cst_47 = arith.constant 1.000000e+00 : f32
    %98 = vector.broadcast %cst_47 : f32 to vector<16x64xf32>
    %99 = arith.addf %98, %97 : vector<16x64xf32>
    %cst_48 = arith.constant 5.000000e-01 : f32
    %100 = vector.broadcast %cst_48 : f32 to vector<16x64xf32>
    %101 = arith.mulf %100, %99 : vector<16x64xf32>
    %102 = arith.mulf %89, %101 : vector<16x64xf32>
    %103 = arith.truncf %102 : vector<16x64xf32> to vector<16x64xbf16>
    %c0_49 = arith.constant 0 : index
    %c0_50 = arith.constant 0 : index
    %104 = vector.load %arg16[%c0_49, %c0_50] : memref<64x32xbf16, #tpu.memory_space<vmem>>, vector<64x32xbf16>
    %cst_51 = arith.constant dense<0.000000e+00> : vector<16x32xf32>
    %105 = tpu.matmul %103, %104, %cst_51 {dimension_numbers = #tpu.dot_dimension_numbers<[1], [0], [0], [1], [0, 0, 1, 1], [], []>} : vector<16x64xbf16>, vector<64x32xbf16>, vector<16x32xf32> -> vector<16x32xf32>
    %c0_52 = arith.constant 0 : index
    %c0_53 = arith.constant 0 : index
    %106 = vector.load %arg17[%c0_52, %c0_53] : memref<1x32xf32, #tpu.memory_space<vmem>>, vector<1x32xf32>
    %107 = vector.broadcast %106 : vector<1x32xf32> to vector<16x32xf32>
    %108 = arith.addf %105, %107 : vector<16x32xf32>
    %109 = arith.addf %61, %108 : vector<16x32xf32>
    %110 = vector.shape_cast %109 : vector<16x32xf32> to vector<1x16x32xf32>
    %c0_54 = arith.constant 0 : index
    %c0_55 = arith.constant 0 : index
    %c0_56 = arith.constant 0 : index
    %111 = vector.load %arg18[%c0_54, %c0_55, %c0_56] : memref<1x16x32xf32, #tpu.memory_space<vmem>>, vector<1x16x32xf32>
    tpu.vector_store %arg18[%c0_54, %c0_55, %c0_56], %110 {strides = array<i32>} : memref<1x16x32xf32, #tpu.memory_space<vmem>>, vector<1x16x32xf32>,
    return
  }
  func.func @transform_0(%arg0: i32, %arg1: i32) -> (i32, i32, i32) {
    %c0_i32 = arith.constant 0 : i32
    %c0_i32_0 = arith.constant 0 : i32
    return %arg0, %arg1, %c0_i32 : i32, i32, i32
  }
  func.func @transform_1(%arg0: i32, %arg1: i32) -> (i32, i32, i32) {
    %c0_i32 = arith.constant 0 : i32
    %c0_i32_0 = arith.constant 0 : i32
    %c0_i32_1 = arith.constant 0 : i32
    return %arg0, %c0_i32, %c0_i32_0 : i32, i32, i32
  }
  func.func @transform_2(%arg0: i32, %arg1: i32) -> (i32, i32) {
    %c0_i32 = arith.constant 0 : i32
    %c0_i32_0 = arith.constant 0 : i32
    %c0_i32_1 = arith.constant 0 : i32
    return %c0_i32, %c0_i32_0 : i32, i32
  }
  func.func @transform_3(%arg0: i32, %arg1: i32) -> (i32, i32) {
    %c0_i32 = arith.constant 0 : i32
    %c0_i32_0 = arith.constant 0 : i32
    %c0_i32_1 = arith.constant 0 : i32
    return %c0_i32, %c0_i32_0 : i32, i32
  }
  func.func @transform_4(%arg0: i32, %arg1: i32) -> (i32, i32) {
    %c0_i32 = arith.constant 0 : i32
    %c0_i32_0 = arith.constant 0 : i32
    %c0_i32_1 = arith.constant 0 : i32
    return %c0_i32, %c0_i32_0 : i32, i32
  }
  func.func @transform_5(%arg0: i32, %arg1: i32) -> (i32, i32) {
    %c0_i32 = arith.constant 0 : i32
    %c0_i32_0 = arith.constant 0 : i32
    %c0_i32_1 = arith.constant 0 : i32
    return %c0_i32, %c0_i32_0 : i32, i32
  }
  func.func @transform_6(%arg0: i32, %arg1: i32) -> (i32, i32) {
    %c0_i32 = arith.constant 0 : i32
    %c0_i32_0 = arith.constant 0 : i32
    %c0_i32_1 = arith.constant 0 : i32
    return %c0_i32, %c0_i32_0 : i32, i32
  }
  func.func @transform_7(%arg0: i32, %arg1: i32) -> (i32, i32) {
    %c0_i32 = arith.constant 0 : i32
    %c0_i32_0 = arith.constant 0 : i32
    %c0_i32_1 = arith.constant 0 : i32
    return %c0_i32, %c0_i32_0 : i32, i32
  }
  func.func @transform_8(%arg0: i32, %arg1: i32) -> (i32, i32) {
    %c0_i32 = arith.constant 0 : i32
    %c0_i32_0 = arith.constant 0 : i32
    %c0_i32_1 = arith.constant 0 : i32
    return %c0_i32, %c0_i32_0 : i32, i32
  }
  func.func @transform_9(%arg0: i32, %arg1: i32) -> (i32, i32) {
    %c0_i32 = arith.constant 0 : i32
    %c0_i32_0 = arith.constant 0 : i32
    %c0_i32_1 = arith.constant 0 : i32
    return %c0_i32, %c0_i32_0 : i32, i32
  }
  func.func @transform_10(%arg0: i32, %arg1: i32) -> (i32, i32) {
    %c0_i32 = arith.constant 0 : i32
    %c0_i32_0 = arith.constant 0 : i32
    %c0_i32_1 = arith.constant 0 : i32
    return %c0_i32, %c0_i32_0 : i32, i32
  }
  func.func @transform_11(%arg0: i32, %arg1: i32) -> (i32, i32) {
    %c0_i32 = arith.constant 0 : i32
    %c0_i32_0 = arith.constant 0 : i32
    %c0_i32_1 = arith.constant 0 : i32
    return %c0_i32, %c0_i32_0 : i32, i32
  }
  func.func @transform_12(%arg0: i32, %arg1: i32) -> (i32, i32) {
    %c0_i32 = arith.constant 0 : i32
    %c0_i32_0 = arith.constant 0 : i32
    %c0_i32_1 = arith.constant 0 : i32
    return %c0_i32, %c0_i32_0 : i32, i32
  }
  func.func @transform_13(%arg0: i32, %arg1: i32) -> (i32, i32) {
    %c0_i32 = arith.constant 0 : i32
    %c0_i32_0 = arith.constant 0 : i32
    %c0_i32_1 = arith.constant 0 : i32
    return %c0_i32, %c0_i32_0 : i32, i32
  }
  func.func @transform_14(%arg0: i32, %arg1: i32) -> (i32, i32) {
    %c0_i32 = arith.constant 0 : i32
    %c0_i32_0 = arith.constant 0 : i32
    %c0_i32_1 = arith.constant 0 : i32
    return %c0_i32, %c0_i32_0 : i32, i32
  }
  func.func @transform_15(%arg0: i32, %arg1: i32) -> (i32, i32) {
    %c0_i32 = arith.constant 0 : i32
    %c0_i32_0 = arith.constant 0 : i32
    %c0_i32_1 = arith.constant 0 : i32
    return %c0_i32, %c0_i32_0 : i32, i32
  }
  func.func @transform_16(%arg0: i32, %arg1: i32) -> (i32, i32, i32) {
    %c0_i32 = arith.constant 0 : i32
    %c0_i32_0 = arith.constant 0 : i32
    return %arg0, %arg1, %c0_i32 : i32, i32, i32
  }
}

</mosaic_0001>

<bundles_post_ra>
// kernel: tpu_custom_call.1
= control target key start
LH: loop header
LB: loop body
LE: loop exit
PB: predicated region body
PF: predicated region fallthrough
CT: control target
= control target key end

     0   :  { %s4449_s0 = inlined_call_operand.vmem [shape: f32[2,16,32], index: 0, kind: input, shape index: {}]   ;;  %s4450_s1 = inlined_call_operand.hbm [shape: f32[2,16,32], index: 1, kind: input, shape index: {}]   ;;  %s4451_s2 = inlined_call_operand.vmem [shape: f32[1,32], index: 2, kind: input, shape index: {}]   ;;  %s4452_s3 = inlined_call_operand.vmem [shape: f32[1,32], index: 3, kind: input, shape index: {}]   ;;  %s4453_s4 = inlined_call_operand.vmem [shape: f32[1,32], index: 4, kind: input, shape index: {}]   ;;  %s4454_s5 = inlined_call_operand.vmem [shape: f32[1,32], index: 5, kind: input, shape index: {}]   ;;  %s4455_s6 = inlined_call_operand.vmem [shape: bf16[32,32], index: 6, kind: input, shape index: {}]   ;;  %s4456_s7 = inlined_call_operand.vmem [shape: f32[1,32], index: 7, kind: input, shape index: {}]   ;;  %s4457_s8 = inlined_call_operand.hbm [shape: bf16[32,64], index: 8, kind: input, shape index: {}]   ;;  %s4458_s9 = inlined_call_operand.vmem [shape: f32[1,64], index: 9, kind: input, shape index: {}]   ;;  %s4459_s10 = inlined_call_operand.hbm [shape: bf16[32,32], index: 10, kind: input, shape index: {}]   ;;  %s4460_s11 = inlined_call_operand.vmem [shape: f32[1,32], index: 11, kind: input, shape index: {}]   ;;  %s4461_s12 = inlined_call_operand.hbm [shape: bf16[32,64], index: 12, kind: input, shape index: {}]   ;;  %s4462_s13 = inlined_call_operand.vmem [shape: f32[1,64], index: 13, kind: input, shape index: {}]   ;;  %s4463_s14 = inlined_call_operand.vmem [shape: bf16[64,32], index: 14, kind: input, shape index: {}]   ;;  %s4464_s15 = inlined_call_operand.vmem [shape: f32[1,32], index: 15, kind: input, shape index: {}]   ;;  %s4465_s16 = inlined_call_operand.hbm [shape: f32[2,16,32], index: 16, kind: output, shape index: {}]  }
   0x1   :  { %4475 = sst [smem:[#allocation20_spill]] %s4449_s0 }
   0x2   :  { %4476 = sst [smem:[#allocation21_spill]] %s4454_s5 }
   0x3   :  { %4477 = sst [smem:[#allocation22_spill]] %s4457_s8 }
   0x4   :  { %4478 = sst [smem:[#allocation23_spill]] %s4459_s10 }
   0x5   :  { %4479 = sst [smem:[#allocation24_spill]] %s4461_s12 }
   0x6   :  { %4480 = sst [smem:[#allocation25_spill]] %s4462_s13 }
   0x7   :  { %4481 = sst [smem:[#allocation26_spill]] %s4463_s14 }
   0x8   :  { %4482 = sst [smem:[#allocation27_spill]] %s4464_s15 }
   0x9   :  { %4483 = sst [smem:[#allocation28_spill]] %s4465_s16 }
   0xa   :  { %21 = vsyncpa [#allocation5], 0 }
   0xb   :  { %23 = vsyncpa [#allocation5 + $0x1], 0 }
   0xc   :  { %24 = vsyncpa [#allocation8], 0 }
   0xd   :  { %25 = vsyncpa [#allocation11], 0 }
   0xe   :  { %26 = vsyncpa [#allocation6], 0 }
   0xf   :  { %28 = vsyncpa [#allocation6 + $0x1], 0  ;;  %s3833_s21 = smov 0   ;;  %s3835_s22 = smov 0  }
  0x10   :  { %s3837_s23 = smov 0   ;;  %s3839_s24 = smov 0  }
  0x11   :  { %s3841_s25 = smov 0   ;;  %s3843_s26 = smov 0  }
  0x12 LB: > { %4484 = sst [smem:[#allocation17_spill]] %s3705_s21  ;;  %s3094_s27 = sadd.s32 4294967295, %s3725_s26   ;;  %s3725_s26 = sphi %s3843_s26, %s34_s26   ;;  %s3721_s25 = sphi %s3841_s25, %s4516_s25   ;;  %s3717_s24 = sphi %s3839_s24, %s4515_s24   ;;  %s3713_s23 = sphi %s3837_s23, %s4514_s23   ;;  %s3709_s22 = sphi %s3835_s22, %s4513_s22   ;;  %s3705_s21 = sphi %s3833_s21, %s4512_s21  }
  0x13   : > { %s3095_s28 = sadd.s32 4294967294, %s3725_s26   ;;  %p94_p0 = scmp.ne.s32.totalorder %s3709_s22, %s3705_s21 }
  0x14   : > { %p3867_p1 = scmp.eq.s32.totalorder %s3094_s27, 0  ;;  %p3871_p2 = scmp.eq.s32.totalorder %s3094_s27, 1 }
  0x15   : > { %p420_p3 = scmp.eq.s32.totalorder %s3095_s28, 1  ;;  %p3096_p5 = scmp.ge.s32.totalorder %s3725_s26, 1 }
  0x16   : > { %s4485_s29 = scalar_select %p3867_p1, 1, 0 }
  0x17   : > { %p3877_p4 = por %p3867_p1, %p94_p0  ;;  %p3882_p6 = por %p420_p3, %p94_p0 }
  0x18   : > { %p427_p7 = scmp.lt.s32.totalorder %s3725_s26, 3  ;;  %s3727_s19 = smov [#allocation7]  }
  0x19   : > { %s4487_s0 = scalar_select %p3877_p4, 1, 0 }
  0x1a   : > { %s4488_s17 = scalar_select %p3882_p6, 1, 0 }
  0x1b   : > { %p3887_p8 = pnand %p3096_p5, %p427_p7  ;;  %s457_s20 = sshll.u32 %s3727_s19, 4  ;;  %s458_s20 = int_to_ptr.vmem [resolvable:$true] %s457_s20 }
  0x1c   : > { %4489 = sst [smem:[#allocation18_spill]] %s4488_s17  ;;  %s3728_s28 = smov [#allocation9]  }
  0x1d   : > { %s4490_s18 = scalar_select %p3887_p8, 1, 0 }
  0x1e   : > { %p3353_p9 = pneg %p3887_p8  ;;  %s473_s17 = sshll.u32 %s3728_s28, 4  ;;  %s474_s17 = int_to_ptr.vmem [resolvable:$true] %s473_s17 }
  0x1f   : > { %s3729_s21 = smov [#allocation10]   ;;  %s3542_s15 = scalar_lea.vmem %s458_s20, 256 }
  0x20   : > { %p3896_p11 = pnand %p3353_p9, %p3867_p1  ;;  %s489_s16 = sshll.u32 %s3729_s21, 4  ;;  %s490_s16 = int_to_ptr.vmem [resolvable:$true] %s489_s16 }
  0x21   : > { %p3543_p13 = scmp.ne.s32.totalorder %s458_s20, %s3542_s15  ;;  %p3550_p5 = scmp.lt.s32.totalorder %s458_s20, %s458_s20 }
  0x22   : > { %p3533_p12 = pneg %p3896_p11  ;;  %p3551_p7 = scmp.lt.s32.totalorder %s3542_s15, %s3542_s15 }
  0x24   : > { %p3545_p0 = pnand %p3543_p13, %p3533_p12  ;;  %p3552_p9 = por %p3551_p7, %p3550_p5 }
  0x26   : > { %p3546_p3 = pneg %p3545_p0 }
  0x28   : > { %p3553_p10 = pnand %p3552_p9, %p3546_p3 }
  0x2a   : > { %3556 = shalt.err (!%p3553_p10)
}
  0x2b   : > { %s3730_s19 = smov 64   ;;  %s3731_s28 = smov 4  }
  0x2c   : > { %s4492_s8 = sld [smem:[#allocation22_spill]]  ;;  %s3568_s14 = scalar_lea.vmem %s474_s17, 256 }
  0x2d   : > { %p3569_p6 = scmp.ne.s32.totalorder %s474_s17, %s3568_s14  ;;  %p3576_p1 = scmp.lt.s32.totalorder %s474_s17, %s474_s17 }
  0x2e   : > { %p3577_p4 = scmp.lt.s32.totalorder %s3568_s14, %s3568_s14 }
  0x2f   : > { %p3571_p13 = pnand %p3569_p6, %p3533_p12 }
  0x30   : > { %p3578_p5 = por %p3577_p4, %p3576_p1 }
  0x31   : > { %p3572_p0 = pneg %p3571_p13 }
  0x32   : > { %3356 = dma.hbm_to_vmem [thread:$0]  (!%p3896_p11), %s4492_s8, 256, %s458_s20, [#allocation8], %s3730_s19, %s3730_s19, %s3731_s28  }
  0x33   : > { %p3579_p3 = pnand %p3578_p5, %p3572_p0 }
  0x35   : > { %3582 = shalt.err (!%p3579_p3)
}
  0x36   : > { %s4493_s10 = sld [smem:[#allocation23_spill]]  ;;  %s3594_s13 = scalar_lea.vmem %s490_s16, 256 }
  0x37   : > { %p3595_p10 = scmp.ne.s32.totalorder %s490_s16, %s3594_s13  ;;  %p3602_p9 = scmp.lt.s32.totalorder %s490_s16, %s490_s16 }
  0x38   : > { %p3603_p13 = scmp.lt.s32.totalorder %s3594_s13, %s3594_s13 }
  0x39   : > { %p3597_p7 = pnand %p3595_p10, %p3533_p12 }
  0x3a   : > { %p3604_p8 = por %p3603_p13, %p3602_p9 }
  0x3b   : > { %p3598_p6 = pneg %p3597_p7 }
  0x3c   : > { %3359 = dma.hbm_to_vmem [thread:$0]  (!%p3896_p11), %s4493_s10, 256, %s474_s17, [#allocation8], %s3730_s19, %s3730_s19, %s3731_s28  }
  0x3d   : > { %p3605_p1 = pnand %p3604_p8, %p3598_p6 }
  0x3f   : > { %3608 = shalt.err (!%p3605_p1)
}
  0x40   : > { %s4494_s12 = sld [smem:[#allocation24_spill]]  ;;  %s81_s5 = sadd.s32 1, %s3713_s23 }
  0x41   : > { %s46_s17 = sadd.s32 1, %s3721_s25  ;;  %p88_p4 = scmp.ne.s32.totalorder %s3713_s23, %s3709_s22 }
  0x42   : > { %p48_p8 = scmp.ge.s32.totalorder %s46_s17, 2  ;;  %p89_p12 = scmp.eq.s32.totalorder %s3725_s26, 0 }
  0x43   : > { %p3933_p0 = por %p3871_p2, %p88_p4  ;;  %p3374_p5 = scmp.lt.s32.totalorder %s3725_s26, 2 }
  0x44   : > { %s4518_s17 = smov (%p48_p8, %s46_s17), 0  ;;  %p90_p3 = por %p89_p12, %p88_p4 }
  0x45   : > { %4496 = sst [smem:[#allocation19_spill]] %s4518_s17  ;;  %s525_s21 = sand.u32 1, %s3713_s23  }
  0x46   : > { %3362 = dma.hbm_to_vmem [thread:$0]  (!%p3896_p11), %s4494_s12, 256, %s490_s16, [#allocation11], %s3730_s19, %s3730_s19, %s3731_s28  }
  0x47   : > { %s78_s15 = ssub.s32 %s3721_s25, %s4518_s17  ;;  %s3101_s16 = sshll.u32 %s525_s21, 4 }
  0x48   : > { %p79_p10 = scmp.eq.s32.totalorder %s78_s15, 0  ;;  %s3193_s19 = sshll.u32 %s3721_s25, 8 }
  0x49   : > { %s535_s30 = scalar_lea.hbm %s4450_s1, %s3193_s19  ;;  %s529_s20 = scalar_lea.vmem [#allocation4], %s3101_s16 }
  0x4a   : > { %s3945_s28 = scalar_select %p79_p10, %s3713_s23, %s81_s5  }
  0x4b   : > { %s536_s8 = sshll.u32 %s529_s20, 4  ;;  %p3952_p2 = pnand %p3374_p5, %p90_p3  ;;  %s537_s8 = int_to_ptr.vmem [resolvable:$true] %s536_s8 }
  0x4c   : > { %s526_s12 = scalar_lea.sflag [#allocation5], %s525_s21  ;;  %s3622_s15 = scalar_lea.vmem %s537_s8, 256 }
  0x4d   : > { %p3611_p11 = pneg %p3952_p2  ;;  %p3623_p7 = scmp.ne.s32.totalorder %s537_s8, %s3622_s15 }
  0x4e   : > { %s3732_s5 = smov [#allocation4]  }
  0x4f   : > { %p3625_p6 = pnand %p3623_p7, %p3611_p11  ;;  %s3627_s17 = sshll.u32 %s3732_s5, 4  ;;  %s3628_s17 = int_to_ptr.vmem [resolvable:$false] %s3627_s17 }
  0x50   : > { %s3629_s19 = scalar_lea.vmem %s3628_s17, 512  ;;  %p3630_p13 = scmp.lt.s32.totalorder %s537_s8, %s3628_s17 }
  0x51   : > { %p3626_p9 = pneg %p3625_p6  ;;  %p3631_p1 = scmp.lt.s32.totalorder %s3629_s19, %s3622_s15 }
  0x53   : > { %p3632_p4 = por %p3631_p1, %p3630_p13 }
  0x55   : > { %p3633_p8 = pnand %p3632_p4, %p3626_p9 }
  0x57   : > { %3636 = shalt.err (!%p3633_p8)
}
  0x58   : > { %s3733_s16 = smov 128   ;;  %s3734_s13 = smov 8  }
  0x59   : > { %3366 = dma.hbm_to_vmem [thread:$0]  (!%p3952_p2), %s535_s30, 256, %s537_s8, %s526_s12, %s3733_s16, %s3733_s16, %s3734_s13  }
  0x5a   : > { %p4498_p12 = scmp.ne.s32.totalorder %s4490_s18, 0 }
  0x5b   : > { %s3963_s21 = sand.u32 (!%p4498_p12), 1, %s3709_s22   ;;  %p4499_p5 = scmp.ne.s32.totalorder (!%p4498_p12), %s4487_s0, 0 }
  0x5c   : > { %548 = sbr.rel (%p4498_p12) target bundleno = 2604 (0xa2c), region = 84  ;;  %s3105_s17 = sshll.u32 (!%p4498_p12), %s3963_s21, 4 }
  0x5d   : > { %s551_s14 = scalar_lea.sflag (!%p4498_p12), [#allocation5], %s3963_s21  ;;  %s554_s20 = scalar_lea.vmem (!%p4498_p12), [#allocation4], %s3105_s17 }
  0x61   : > { %3688 = dma.done.wait (%p4499_p5), %s551_s14, 256  }
  0x62   : > { %3690 = vsyncadd (%p4499_p5), %s551_s14, 4294967040  ;;  %p4500_p3 = scmp.ne.s32.totalorder %s4485_s29, 0 }
  0x64   : > { %3692 = dma.done.wait (%p4500_p3), [#allocation8], 512  }
  0x65   : > { %3694 = vsyncadd (%p4500_p3), [#allocation8], 4294966784 }
  0x66   : > { %3696 = dma.done.wait (%p4500_p3), [#allocation11], 256  }
  0x67   : > { %3698 = vsyncadd (%p4500_p3), [#allocation11], 4294967040  ;;  %p625_p10 = scmp.lt.s32.totalorder %s3717_s24, 1  ;;  %vm644_vm0 = vcmask 261120   ;;  %s4501_s18 = sld [smem:[#allocation20_spill]]  ;;  %v640_v0 = vld [vmem:[%s554_s20] sm:$0xff] }
  0x68   : > { %v641_v2 = vld [vmem:[%s554_s20 + $0x8] sm:$0xff]  ;;  %v645_v3 = vsel %vm644_vm0, %v640_v0, 0.0  ;;  %v3735_v29 = vmov 0.0   ;;  %v3462_v30 = vld [vmem:[#allocation7] sm:$0xff]   ;;  %vm3736_vm1 = vmmov 0   ;;  %s3737_s12 = smov 112  }
  0x69   : > { %s626_s8 = scalar_select %p625_p10, %s3717_s24, 1  ;;  %646 = vadd.xlane.f32.xlu0 %v645_v3  ;;  %v648_v6 = vsel %vm644_vm0, %v641_v2, 0.0  ;;  %v3461_v28 = vld [vmem:[#allocation7 + $0x8] sm:$0xff]   ;;  %3245 = vmatprep.subr.bf16.mxu1 %v3735_v29  ;;  %v3112_v45 = vld [vmem:[%s4451_s2] ss:$0 sm:$0xff]  ;;  %vm1080_vm2 = vcmask 60416  }
  0x6a   : > { %3261 = vmatprep.subr.bf16.mxu0 %v3735_v29  ;;  %3246 = vmatpush3.bf16.msra.mxu1 %v3461_v28  ;;  %v3113_v50 = vld [vmem:[%s4452_s3] ss:$0 sm:$0xff]  ;;  %v3463_v57 = vld [vmem:[%s4455_s6 + $0x8] sm:$0xff]   ;;  %s3738_s0 = smov 120   ;;  %s3739_s15 = smov 104   ;;  %vm1850_vm3 = vcmask 64512  }
  0x6b   : > { %s3194_s10 = sshll.u32 %s626_s8, 4  ;;  %3247 = vmatprep.subr.bf16.mxu1 %v3735_v29  ;;  %3249 = vmatprep.mubr.msk.bf16.mxu1 %vm3736_vm1, %v3735_v29  ;;  %v3464_v61 = vld [vmem:[%s4455_s6] sm:$0xff]   ;;  %vm2054_vm4 = vcmask 130048   ;;  %s3742_s5 = smov 96   ;;  %vm2655_vm5 = vcmask 195584   ;;  %vm2898_vm6 = vcmask 523264  }
  0x6c   : > { %3263 = vmatprep.mubr.msk.bf16.mxu0 %vm3736_vm1, %v3735_v29  ;;  %s3743_s19 = smov 16   ;;  %s3744_s16 = smov 8  }
  0x6d   : > { %s3986_s30 = scalar_lea.vmem %s4501_s18, %s3194_s10  ;;  %649 = vadd.xlane.f32.xlu0 %v648_v6  ;;  %s3745_s13 = smov 24  }
  0x6e   : > { %v1425_v1 = vld [vmem:[%s3986_s30] sm:$0xff]  ;;  %v1426_v5 = vld [vmem:[%s3986_s30 + $0x8] sm:$0xff]  ;;  %3248 = vmatpush3.bf16.msra.mxu1 %v3462_v30  ;;  %s4505_s29 = sld [smem:[#allocation27_spill]]  ;;  %s3746_s10 = smov [#allocation12]  }
  0x6f   : > { %v1430_v4 = vsel %vm644_vm0, %v1425_v1, 0.0  ;;  %v1433_v7 = vsel %vm644_vm0, %v1426_v5, 0.0  ;;  %3253 = vmatprep.subr.bf16.mxu1 %v3735_v29 }
  0x70   : > { %1431 = vadd.xlane.f32.xlu1 %v1430_v4 }
  0x74   : > { %1434 = vadd.xlane.f32.xlu1 %v1433_v7 }
  0xf2   : > { %v647_v8 = vpop.xlane.xlu0 %646 }
  0xf3   : > { %v652_v10 = vmul.f32 0.03125, %v647_v8  ;;  %v3144_v8 = vld [vmem:[%s4456_s7] ss:$0 sm:$0xff] }
  0xf5   : > { %v654_v12 = vsub.f32 %v640_v0, %v652_v10 }
  0xf6   : > { %v650_v14 = vpop.xlane.xlu0 %649 }
  0xf7   : > { %v653_v16 = vmul.f32 0.03125, %v650_v14  ;;  %v656_v18 = vmul.f32 %v654_v12, %v654_v12 }
  0xf9   : > { %v1432_v9 = vpop.xlane.xlu1 %1431  ;;  %v655_v20 = vsub.f32 %v641_v2, %v653_v16  ;;  %v658_v22 = vsel %vm644_vm0, %v656_v18, 0.0  ;;  %v3741_v18 = vmov 1934713408  }
  0xfa   : > { %v1437_v11 = vmul.f32 0.03125, %v1432_v9  ;;  %659 = vadd.xlane.f32.xlu0 %v658_v22 }
  0xfb   : > { %v657_v24 = vmul.f32 %v655_v20, %v655_v20 }
  0xfc   : > { %v1439_v13 = vsub.f32 %v1425_v1, %v1437_v11  ;;  %v3114_v1 = vld [vmem:[%s4458_s9] ss:$0 sm:$0xff] }
  0xfd   : > { %v1435_v15 = vpop.xlane.xlu1 %1434  ;;  %v661_v26 = vsel %vm644_vm0, %v657_v24, 0.0 }
  0xfe   : > { %v1438_v17 = vmul.f32 0.03125, %v1435_v15  ;;  %v1441_v19 = vmul.f32 %v1439_v13, %v1439_v13  ;;  %662 = vadd.xlane.f32.xlu1 %v661_v26  ;;  %v3740_v15 = vmov 1983009808  }
  0xff   : > { %v779_v16 = vunpack.c.l.s4 %v3740_v15 }
 0x100   : > { %v1440_v21 = vsub.f32 %v1426_v5, %v1438_v17  ;;  %v1443_v23 = vsel %vm644_vm0, %v1441_v19, 0.0  ;;  %v781_v17 = vlaneseq  ;;  %v811_v19 = vunpack.c.l.s4 %v3741_v18 }
 0x101   : > { %1444 = vadd.xlane.f32.xlu0 %v1443_v23 }
 0x102   : > { %v1442_v25 = vmul.f32 %v1440_v21, %v1440_v21  ;;  %v812_v24 = vunpack.c.0.s8 %v811_v19 }
 0x104   : > { %v1446_v27 = vsel %vm644_vm0, %v1442_v25, 0.0 }
 0x105   : > { %1447 = vadd.xlane.f32.xlu1 %v1446_v27 }
 0x183   : > { %v660_v31 = vpop.xlane.xlu0 %659 }
 0x184   : > { %v664_v32 = vmul.f32 0.03125, %v660_v31 }
 0x186   : > { %v666_v33 = vadd.f32 1e-06, %v664_v32 }
 0x187   : > { %v663_v34 = vpop.xlane.xlu1 %662 }
 0x188   : > { %3481 = vrsqrt.f32 %v666_v33  ;;  %v665_v36 = vmul.f32 0.03125, %v663_v34 }
 0x18a   : > { %v1445_v35 = vpop.xlane.xlu0 %1444  ;;  %v667_v38 = vadd.f32 1e-06, %v665_v36 }
 0x18b   : > { %v1449_v37 = vmul.f32 0.03125, %v1445_v35 }
 0x18c   : > { %3483 = vrsqrt.f32 %v667_v38 }
 0x18d   : > { %v1451_v39 = vadd.f32 1e-06, %v1449_v37 }
 0x18e   : > { %v1448_v40 = vpop.xlane.xlu1 %1447 }
 0x18f   : > { %v1450_v41 = vmul.f32 0.03125, %v1448_v40  ;;  %3485 = vrsqrt.f32 %v1451_v39 }
 0x191   : > { %v1452_v42 = vadd.f32 1e-06, %v1450_v41 }
 0x193   : > { %3487 = vrsqrt.f32 %v1452_v42 }
 0x195   : > { %v3482_v43 = vpop.eup %3481 }
 0x196   : > { %v670_v44 = vmul.f32 %v3482_v43, %v654_v12 }
 0x198   : > { %v678_v48 = vmul.f32 %v3112_v45, %v670_v44 }
 0x199   : > { %v3484_v46 = vpop.eup %3483 }
 0x19a   : > { %v671_v47 = vmul.f32 %v3484_v46, %v655_v20  ;;  %v686_v55 = vadd.f32 %v3113_v50, %v678_v48  ;;  %v780_v20 = vunpack.c.0.s8 %v779_v16 }
 0x19c   : > { %v3486_v49 = vpop.eup %3485  ;;  %v679_v51 = vmul.f32 %v3112_v45, %v671_v47 }
 0x19d   : > { %v1455_v53 = vmul.f32 %v3486_v49, %v1439_v13 }
 0x19e   : > { %v687_v56 = vadd.f32 %v3113_v50, %v679_v51 }
 0x19f   : > { %v1463_v60 = vmul.f32 %v3112_v45, %v1455_v53 }
 0x1a0   : > { %v3488_v52 = vpop.eup %3487  ;;  %v688_v58 = vpack.c.bf16 %v687_v56, %v686_v55 }
 0x1a1   : > { %v1456_v54 = vmul.f32 %v3488_v52, %v1440_v21  ;;  %v1471_v63 = vadd.f32 %v3113_v50, %v1463_v60  ;;  %v782_v21 = vshrl.u32 %v781_v17, 7 }
 0x1a2   : > { %3250 = vmatmul.mubr.msk.bf16.vlgmr.msra.gmra.mxu1 %vm644_vm0, %v688_v58 }
 0x1a3   : > { %v1464_v59 = vmul.f32 %v3112_v45, %v1456_v54  ;;  %3254 = vmatpush3.bf16.msra.mxu1 %v3463_v57  ;;  %3257 = vmatprep.mubr.msk.bf16.mxu1 %vm3736_vm1, %v3735_v29  ;;  %v4056_v25 = vsub.s32 %v780_v20, %v782_v21  ;;  %v4070_v33 = vsub.s32 %v812_v24, %v782_v21 }
 0x1a4   : > { %3255 = vmatprep.subr.bf16.mxu1 %v3735_v29 }
 0x1a5   : > { %v1472_v62 = vadd.f32 %v3113_v50, %v1464_v59 }
 0x1a7   : > { %3256 = vmatpush3.bf16.msra.mxu1 %v3464_v61  ;;  %v1473_v0 = vpack.c.bf16 %v1472_v62, %v1471_v63 }
 0x1a8   : > { %3267 = vmatprep.subr.bf16.mxu1 %v3735_v29 }
 0x1aa   : > { %3258 = vmatmul.mubr.msk.bf16.vlgmr.msra.gmra.mxu1 %vm644_vm0, %v1473_v0 }
 0x1ab   : > { %3269 = vmatprep.mubr.msk.bf16.mxu1 %vm3736_vm1, %v3735_v29 }
 0x262   : > { %v749_v2 = vpop.f32.mrf.mxu1 }
 0x263   : > { %v4029_v3 = vadd.f32 %v3114_v1, %v749_v2 }
 0x264   : > { %v3251_v4 = vpop.f32.mrf.mxu1 }
 0x265   : > { %764 = vrot.lane.b32.xlu1 %v4029_v3, %s3737_s12  ;;  %758 = vrot.lane.b32.xlu0 %v4029_v3, %s3738_s0 }
 0x266   : > { %v752_v5 = vpop.f32.mrf.mxu1 }
 0x267   : > { %v4033_v6 = vadd.f32 %v3114_v1, %v752_v5 }
 0x268   : > { %v3252_v7 = vpop.f32.mrf.mxu1 }
 0x269   : > { %770 = vrot.lane.b32.xlu0 %v4029_v3, %s3739_s15  ;;  %760 = vrot.lane.b32.xlu1 %v4033_v6, %s3738_s0 }
 0x26a   : > { %v1534_v9 = vpop.f32.mrf.mxu1 }
 0x26b   : > { %v4040_v10 = vadd.f32 %v3144_v8, %v1534_v9 }
 0x26c   : > { %v3259_v11 = vpop.f32.mrf.mxu1 }
 0x26d   : > { %766 = vrot.lane.b32.xlu1 %v4033_v6, %s3737_s12  ;;  %1543 = vrot.lane.b32.xlu0 %v4040_v10, %s3738_s0 }
 0x26e   : > { %v1537_v12 = vpop.f32.mrf.mxu1 }
 0x26f   : > { %v4046_v14 = vadd.f32 %v3144_v8, %v1537_v12 }
 0x270   : > { %v3260_v13 = vpop.f32.mrf.mxu1 }
 0x271   : > { %772 = vrot.lane.b32.xlu1 %v4033_v6, %s3739_s15  ;;  %1549 = vrot.lane.b32.xlu0 %v4040_v10, %s3737_s12 }
 0x275   : > { %1555 = vrot.lane.b32.xlu0 %v4040_v10, %s3739_s15  ;;  %1545 = vrot.lane.b32.xlu1 %v4046_v14, %s3738_s0  ;;  %s4502_s0 = sld [smem:[#allocation21_spill]] }
 0x279   : > { %1551 = vrot.lane.b32.xlu1 %v4046_v14, %s3737_s12  ;;  %s4504_s12 = sld [smem:[#allocation25_spill]] }
 0x27d   : > { %1557 = vrot.lane.b32.xlu1 %v4046_v14, %s3739_s15  ;;  %s4503_s15 = sld [smem:[#allocation26_spill]] }
 0x2d7   : > { %v4052_v22 = vpop.permute.xlu1 %764  ;;  %v4054_v23 = vpop.permute.xlu0 %758 }
 0x2d8   : > { %v776_v26 = vcombine.low %v4029_v3, %v4052_v22  ;;  %v777_v27 = vcombine.high %v4029_v3, %v4052_v22 }
 0x2da   : > { %v784_v34 = vrot.slane %v776_v26, %v4056_v25  ;;  %v791_v35 = vrot.slane %v777_v27, %v4056_v25 }
 0x2db   : > { %v4062_v28 = vpop.permute.xlu1 %760  ;;  %v4064_v30 = vpop.permute.xlu0 %770 }
 0x2dc   : > { %v792_v31 = vcombine.low %v4054_v23, %v4064_v30  ;;  %v793_v32 = vcombine.high %v4054_v23, %v4064_v30 }
 0x2de   : > { %v800_v36 = vrot.slane %v792_v31, %v4056_v25  ;;  %v807_v37 = vrot.slane %v793_v32, %v4056_v25 }
 0x2df   : > { %v4076_v38 = vpop.permute.xlu1 %766  ;;  %v4078_v39 = vpop.permute.xlu0 %1543 }
 0x2e0   : > { %v808_v40 = vcombine.low %v784_v34, %v800_v36  ;;  %v809_v41 = vcombine.high %v784_v34, %v800_v36  ;;  %v824_v42 = vcombine.low %v791_v35, %v807_v37  ;;  %v825_v43 = vcombine.high %v791_v35, %v807_v37 }
 0x2e1   : > { %v844_v44 = vcombine.low %v4033_v6, %v4076_v38  ;;  %v845_v45 = vcombine.high %v4033_v6, %v4076_v38 }
 0x2e2   : > { %v816_v46 = vrot.slane %v808_v40, %v4070_v33  ;;  %v823_v47 = vrot.slane %v809_v41, %v4070_v33  ;;  %v832_v48 = vrot.slane %v824_v42, %v4070_v33  ;;  %v839_v49 = vrot.slane %v825_v43, %v4070_v33 }
 0x2e3   : > { %v4088_v50 = vpop.permute.xlu1 %772  ;;  %v1550_v55 = vpop.permute.xlu0 %1549  ;;  %v852_v56 = vrot.slane %v844_v44, %v4056_v25  ;;  %v859_v57 = vrot.slane %v845_v45, %v4056_v25 }
 0x2e4   : > { %v912_v51 = vcombine.low %v816_v46, %v823_v47  ;;  %v3118_v52 = vcombine.high %v816_v46, %v823_v47  ;;  %v928_v53 = vcombine.low %v832_v48, %v839_v49  ;;  %v3119_v54 = vcombine.high %v832_v48, %v839_v49 }
 0x2e5   : > { %v860_v58 = vcombine.low %v4062_v28, %v4088_v50  ;;  %v861_v59 = vcombine.high %v4062_v28, %v4088_v50  ;;  %v1561_v2 = vcombine.low %v4040_v10, %v1550_v55  ;;  %v1562_v4 = vcombine.high %v4040_v10, %v1550_v55 }
 0x2e6   : > { %v919_v60 = vrot.slane %v912_v51, %v4056_v25  ;;  %v927_v61 = vrot.slane %v3118_v52, %v4056_v25  ;;  %v935_v62 = vrot.slane %v928_v53, %v4056_v25  ;;  %v943_v63 = vrot.slane %v3119_v54, %v4056_v25 }
 0x2e7   : > { %v868_v0 = vrot.slane %v860_v58, %v4056_v25  ;;  %v875_v1 = vrot.slane %v861_v59, %v4056_v25  ;;  %v4104_v16 = vpop.permute.xlu1 %1545  ;;  %v1556_v41 = vpop.permute.xlu0 %1555  ;;  %v1569_v52 = vrot.slane %v1561_v2, %v4056_v25  ;;  %v1576_v53 = vrot.slane %v1562_v4, %v4056_v25 }
 0x2e8   : > { %v944_v5 = vcombine.low %v919_v60, %v927_v61  ;;  %v945_v7 = vcombine.high %v919_v60, %v927_v61  ;;  %v960_v8 = vcombine.low %v935_v62, %v943_v63  ;;  %v961_v9 = vcombine.high %v935_v62, %v943_v63 }
 0x2e9   : > { %v876_v11 = vcombine.low %v852_v56, %v868_v0  ;;  %v877_v12 = vcombine.high %v852_v56, %v868_v0  ;;  %v892_v13 = vcombine.low %v859_v57, %v875_v1  ;;  %v893_v15 = vcombine.high %v859_v57, %v875_v1 }
 0x2ea   : > { %v952_v17 = vrot.slane %v944_v5, %v4070_v33  ;;  %v959_v18 = vrot.slane %v945_v7, %v4070_v33  ;;  %v968_v19 = vrot.slane %v960_v8, %v4070_v33  ;;  %v975_v20 = vrot.slane %v961_v9, %v4070_v33 }
 0x2eb   : > { %v884_v10 = vrot.slane %v876_v11, %v4070_v33  ;;  %v891_v21 = vrot.slane %v877_v12, %v4070_v33  ;;  %v900_v24 = vrot.slane %v892_v13, %v4070_v33  ;;  %v907_v26 = vrot.slane %v893_v15, %v4070_v33  ;;  %v1552_v51 = vpop.permute.xlu1 %1551 }
 0x2ec   : > { %v976_v27 = vcombine.low %v952_v17, %v968_v19  ;;  %v977_v31 = vcombine.high %v952_v17, %v968_v19  ;;  %v978_v32 = vcombine.low %v959_v18, %v975_v20  ;;  %v979_v34 = vcombine.high %v959_v18, %v975_v20 }
 0x2ed   : > { %v980_v35 = vcombine.low %v884_v10, %v891_v21  ;;  %v3120_v36 = vcombine.high %v884_v10, %v891_v21  ;;  %v996_v37 = vcombine.low %v900_v24, %v907_v26  ;;  %v3121_v40 = vcombine.high %v900_v24, %v907_v26 }
 0x2ee   : > { %v3195_v42 = vpack.c.bf16 %v976_v27, %v976_v27  ;;  %v3197_v43 = vpack.c.bf16 %v977_v31, %v977_v31  ;;  %v3199_v44 = vpack.c.bf16 %v978_v32, %v978_v32  ;;  %v3201_v45 = vpack.c.bf16 %v979_v34, %v979_v34 }
 0x2ef   : > { %v987_v46 = vrot.slane %v980_v35, %v4056_v25  ;;  %v995_v47 = vrot.slane %v3120_v36, %v4056_v25  ;;  %v1003_v48 = vrot.slane %v996_v37, %v4056_v25  ;;  %v1011_v49 = vrot.slane %v3121_v40, %v4056_v25  ;;  %v1558_v19 = vpop.permute.xlu1 %1557 }
 0x2f0   : > { %1081 = vst.msk [vmem:[#allocation2] sm:$0xf] %vm1080_vm2, %v3195_v42  ;;  %1083 = vst.msk [vmem:[#allocation2 + $0x8] sm:$0xf] %vm1080_vm2, %v3197_v43  ;;  %v1577_v54 = vcombine.low %v4078_v39, %v1556_v41  ;;  %v1578_v55 = vcombine.high %v4078_v39, %v1556_v41  ;;  %v1629_v62 = vcombine.low %v4046_v14, %v1552_v51 }
 0x2f1   : > { %1085 = vst.msk [vmem:[#allocation2 + $0x10] sm:$0xf] %vm1080_vm2, %v3199_v44  ;;  %1087 = vst.msk [vmem:[#allocation2 + $0x18] sm:$0xf] %vm1080_vm2, %v3201_v45  ;;  %v1012_v56 = vcombine.low %v987_v46, %v995_v47  ;;  %v1013_v57 = vcombine.high %v987_v46, %v995_v47  ;;  %v1028_v58 = vcombine.low %v1003_v48, %v1011_v49 }
 0x2f2   : > { %v1029_v59 = vcombine.high %v1003_v48, %v1011_v49  ;;  %v1585_v60 = vrot.slane %v1577_v54, %v4056_v25  ;;  %v1592_v61 = vrot.slane %v1578_v55, %v4056_v25  ;;  %v1630_v63 = vcombine.high %v4046_v14, %v1552_v51 }
 0x2f3   : > { %v1020_v0 = vrot.slane %v1012_v56, %v4070_v33  ;;  %v1027_v1 = vrot.slane %v1013_v57, %v4070_v33  ;;  %v1036_v2 = vrot.slane %v1028_v58, %v4070_v33  ;;  %v1645_v34 = vcombine.low %v4104_v16, %v1558_v19 }
 0x2f4   : > { %v1043_v39 = vrot.slane %v1029_v59, %v4070_v33  ;;  %v1593_v4 = vcombine.low %v1569_v52, %v1585_v60  ;;  %v1594_v5 = vcombine.high %v1569_v52, %v1585_v60  ;;  %v1609_v7 = vcombine.low %v1576_v53, %v1592_v61 }
 0x2f5   : > { %v1610_v8 = vcombine.high %v1576_v53, %v1592_v61  ;;  %v1044_v9 = vcombine.low %v1020_v0, %v1036_v2  ;;  %v1045_v11 = vcombine.high %v1020_v0, %v1036_v2  ;;  %v1646_v35 = vcombine.high %v4104_v16, %v1558_v19 }
 0x2f6   : > { %v1046_v12 = vcombine.low %v1027_v1, %v1043_v39  ;;  %v1047_v13 = vcombine.high %v1027_v1, %v1043_v39  ;;  %v1601_v15 = vrot.slane %v1593_v4, %v4070_v33  ;;  %v1608_v14 = vrot.slane %v1594_v5, %v4070_v33 }
 0x2f7   : > { %v1617_v17 = vrot.slane %v1609_v7, %v4070_v33  ;;  %v1624_v18 = vrot.slane %v1610_v8, %v4070_v33  ;;  %v3196_v20 = vpack.c.bf16 %v1044_v9, %v1044_v9  ;;  %v3198_v10 = vpack.c.bf16 %v1045_v11, %v1045_v11 }
 0x2f8   : > { %v3200_v21 = vpack.c.bf16 %v1046_v12, %v1046_v12  ;;  %v3202_v24 = vpack.c.bf16 %v1047_v13, %v1047_v13  ;;  %v1697_v26 = vcombine.low %v1601_v15, %v1608_v14  ;;  %v3148_v27 = vcombine.high %v1601_v15, %v1608_v14 }
 0x2f9   : > { %v1713_v31 = vcombine.low %v1617_v17, %v1624_v18  ;;  %v3149_v32 = vcombine.high %v1617_v17, %v1624_v18  ;;  %1082 = vst.msk [vmem:[#allocation2 + $0x4] sm:$0xf] %vm1080_vm2, %v3196_v20  ;;  %1084 = vst.msk [vmem:[#allocation2 + $0xc] sm:$0xf] %vm1080_vm2, %v3198_v10  ;;  %v1637_v36 = vrot.slane %v1629_v62, %v4056_v25 }
 0x2fa   : > { %1086 = vst.msk [vmem:[#allocation2 + $0x14] sm:$0xf] %vm1080_vm2, %v3200_v21  ;;  %1088 = vst.msk [vmem:[#allocation2 + $0x1c] sm:$0xf] %vm1080_vm2, %v3202_v24  ;;  %v1644_v37 = vrot.slane %v1630_v63, %v4056_v25  ;;  %v1653_v40 = vrot.slane %v1645_v34, %v4056_v25  ;;  %v1660_v41 = vrot.slane %v1646_v35, %v4056_v25 }
 0x2fb   : > { %v1704_v42 = vrot.slane %v1697_v26, %v4056_v25  ;;  %v1712_v43 = vrot.slane %v3148_v27, %v4056_v25  ;;  %v1720_v44 = vrot.slane %v1713_v31, %v4056_v25  ;;  %v1728_v45 = vrot.slane %v3149_v32, %v4056_v25 }
 0x2fc   : > { %v1661_v46 = vcombine.low %v1637_v36, %v1653_v40  ;;  %v1662_v47 = vcombine.high %v1637_v36, %v1653_v40  ;;  %v1677_v48 = vcombine.low %v1644_v37, %v1660_v41  ;;  %v1678_v16 = vcombine.high %v1644_v37, %v1660_v41 }
 0x2fd   : > { %v1729_v55 = vcombine.low %v1704_v42, %v1712_v43  ;;  %v1745_v56 = vcombine.low %v1720_v44, %v1728_v45  ;;  %v1730_v15 = vcombine.high %v1704_v42, %v1712_v43  ;;  %v1746_v14 = vcombine.high %v1720_v44, %v1728_v45 }
 0x2fe   : > { %v1669_v49 = vrot.slane %v1661_v46, %v4070_v33  ;;  %v1676_v51 = vrot.slane %v1662_v47, %v4070_v33  ;;  %v1685_v52 = vrot.slane %v1677_v48, %v4070_v33  ;;  %v1692_v53 = vrot.slane %v1678_v16, %v4070_v33 }
 0x2ff   : > { %v1737_v4 = vrot.slane %v1729_v55, %v4070_v33  ;;  %v1753_v5 = vrot.slane %v1745_v56, %v4070_v33  ;;  %v1744_v32 = vrot.slane %v1730_v15, %v4070_v33  ;;  %v1760_v34 = vrot.slane %v1746_v14, %v4070_v33 }
 0x300   : > { %v3465_v54 = vld [vmem:[#allocation2] sm:$0xff]   ;;  %v1765_v57 = vcombine.low %v1669_v49, %v1676_v51  ;;  %v3150_v58 = vcombine.high %v1669_v49, %v1676_v51  ;;  %v1781_v59 = vcombine.low %v1685_v52, %v1692_v53  ;;  %v3151_v60 = vcombine.high %v1685_v52, %v1692_v53  ;;  %v3466_v61 = vld [vmem:[#allocation2 + $0x8] sm:$0xff]  }
 0x301   : > { %v1855_v62 = vsel %vm1850_vm3, %v3465_v54, 0  ;;  %v1907_v39 = vsel %vm1850_vm3, %v3466_v61, 0  ;;  %v1761_v17 = vcombine.low %v1737_v4, %v1753_v5  ;;  %v1762_v18 = vcombine.high %v1737_v4, %v1753_v5  ;;  %v3467_v10 = vld [vmem:[#allocation2 + $0x10] sm:$0xff]   ;;  %v3468_v21 = vld [vmem:[#allocation2 + $0x18] sm:$0xff]  }
 0x302   : > { %v1772_v63 = vrot.slane %v1765_v57, %v4056_v25  ;;  %v1780_v0 = vrot.slane %v3150_v58, %v4056_v25  ;;  %v1788_v1 = vrot.slane %v1781_v59, %v4056_v25  ;;  %v1796_v2 = vrot.slane %v3151_v60, %v4056_v25  ;;  %3262 = vmatpush3.bf16.xpose.msra.mxu0 %v1855_v62 }
 0x303   : > { %3273 = vmatprep.subr.bf16.mxu0 %v3735_v29  ;;  %3268 = vmatpush3.bf16.xpose.msra.mxu1 %v1907_v39  ;;  %v1959_v35 = vsel %vm1850_vm3, %v3467_v10, 0  ;;  %v2011_v36 = vsel %vm1850_vm3, %v3468_v21, 0  ;;  %v1763_v41 = vcombine.low %v1744_v32, %v1760_v34  ;;  %v1764_v42 = vcombine.high %v1744_v32, %v1760_v34 }
 0x304   : > { %v1797_v7 = vcombine.low %v1772_v63, %v1780_v0  ;;  %v1813_v8 = vcombine.low %v1788_v1, %v1796_v2  ;;  %3279 = vmatprep.subr.bf16.mxu1 %v3735_v29  ;;  %v1798_v9 = vcombine.high %v1772_v63, %v1780_v0  ;;  %v1814_v11 = vcombine.high %v1788_v1, %v1796_v2 }
 0x306   : > { %v1805_v12 = vrot.slane %v1797_v7, %v4070_v33  ;;  %v1821_v13 = vrot.slane %v1813_v8, %v4070_v33  ;;  %v1812_v24 = vrot.slane %v1798_v9, %v4070_v33  ;;  %v1828_v26 = vrot.slane %v1814_v11, %v4070_v33 }
 0x308   : > { %v1829_v19 = vcombine.low %v1805_v12, %v1821_v13  ;;  %v1830_v20 = vcombine.high %v1805_v12, %v1821_v13  ;;  %v1831_v37 = vcombine.low %v1812_v24, %v1828_v26  ;;  %v1832_v40 = vcombine.high %v1812_v24, %v1828_v26 }
 0x30a   : > { %v1833_v27 = vpack.c.bf16 %v1829_v19, %v1761_v17  ;;  %v1834_v31 = vpack.c.bf16 %v1830_v20, %v1762_v18  ;;  %v1835_v43 = vpack.c.bf16 %v1831_v37, %v1763_v41  ;;  %v1836_v44 = vpack.c.bf16 %v1832_v40, %v1764_v42 }
 0x30c   : > { %3264 = vmatmul.mubr.msk.bf16.vlgmr.msra.gmra.mxu0 %vm1850_vm3, %v1833_v27  ;;  %3270 = vmatmul.mubr.msk.bf16.vlgmr.msra.gmra.mxu1 %vm1850_vm3, %v1834_v31 }
 0x30d   : > { %3274 = vmatpush3.bf16.xpose.msra.mxu0 %v1959_v35  ;;  %3280 = vmatpush3.bf16.xpose.msra.mxu1 %v2011_v36 }
 0x30e   : > { %3275 = vmatprep.mubr.msk.bf16.mxu0 %vm3736_vm1, %v3735_v29  ;;  %3281 = vmatprep.mubr.msk.bf16.mxu1 %vm3736_vm1, %v3735_v29 }
 0x30f   : > { %3285 = vmatprep.subr.bf16.mxu0 %v3735_v29  ;;  %3291 = vmatprep.subr.bf16.mxu1 %v3735_v29 }
 0x314   : > { %3276 = vmatmul.mubr.msk.bf16.vlgmr.msra.gmra.mxu0 %vm1850_vm3, %v1835_v43  ;;  %3282 = vmatmul.mubr.msk.bf16.vlgmr.msra.gmra.mxu1 %vm1850_vm3, %v1836_v44 }
 0x315   : > { %3287 = vmatprep.mubr.msk.bf16.mxu0 %vm3736_vm1, %v3735_v29  ;;  %3293 = vmatprep.mubr.msk.bf16.mxu1 %vm3736_vm1, %v3735_v29 }
 0x3cc   : > { %v1891_v45 = vpop.f32.mrf.mxu0  ;;  %v1943_v46 = vpop.f32.mrf.mxu1 }
 0x3cd   : > { %v2055_v47 = vsel %vm2054_vm4, %v1891_v45, -inf  ;;  %v2061_v52 = vsel %vm2054_vm4, %v1943_v46, -inf }
 0x3ce   : > { %v3271_v48 = vpop.f32.mrf.mxu1  ;;  %2056 = vmax.xlane.f32.xlu0 %v2055_v47  ;;  %v3265_v16 = vpop.f32.mrf.mxu0 }
 0x3d0   : > { %v1894_v49 = vpop.f32.mrf.mxu0  ;;  %v1946_v51 = vpop.f32.mrf.mxu1 }
 0x3d1   : > { %v2058_v53 = vsel %vm2054_vm4, %v1894_v49, -inf  ;;  %v2064_v58 = vsel %vm2054_vm4, %v1946_v51, -inf }
 0x3d2   : > { %v3272_v54 = vpop.f32.mrf.mxu1  ;;  %2062 = vmax.xlane.f32.xlu0 %v2061_v52  ;;  %2059 = vmax.xlane.f32.xlu1 %v2058_v53  ;;  %v3266_v55 = vpop.f32.mrf.mxu0 }
 0x3d4   : > { %v1995_v56 = vpop.f32.mrf.mxu0  ;;  %v2047_v57 = vpop.f32.mrf.mxu1 }
 0x3d5   : > { %v2067_v63 = vsel %vm2054_vm4, %v1995_v56, -inf  ;;  %v2073_v39 = vsel %vm2054_vm4, %v2047_v57, -inf }
 0x3d6   : > { %v3283_v59 = vpop.f32.mrf.mxu1  ;;  %2065 = vmax.xlane.f32.xlu0 %v2064_v58  ;;  %v3277_v60 = vpop.f32.mrf.mxu0 }
 0x3d8   : > { %v1998_v61 = vpop.f32.mrf.mxu0  ;;  %v2050_v62 = vpop.f32.mrf.mxu1 }
 0x3d9   : > { %v2070_v0 = vsel %vm2054_vm4, %v1998_v61, -inf  ;;  %v2076_v4 = vsel %vm2054_vm4, %v2050_v62, -inf }
 0x3da   : > { %v3284_v1 = vpop.f32.mrf.mxu1  ;;  %2068 = vmax.xlane.f32.xlu0 %v2067_v63  ;;  %2071 = vmax.xlane.f32.xlu1 %v2070_v0  ;;  %v3278_v2 = vpop.f32.mrf.mxu0 }
 0x3de   : > { %2074 = vmax.xlane.f32.xlu0 %v2073_v39  ;;  %2077 = vmax.xlane.f32.xlu1 %v2076_v4 }
 0x3ef   : > { %1091 = vrot.lane.b32.xlu1 %v4033_v6, %s3742_s5 }
 0x3f3   : > { %1093 = vrot.lane.b32.xlu1 %v4054_v23, %s3742_s5 }
 0x3f4   : > { %1089 = vrot.lane.b32.xlu0 %v4029_v3, %s3742_s5 }
 0x3f7   : > { %1095 = vrot.lane.b32.xlu1 %v4062_v28, %s3742_s5 }
 0x3f8   : > { %1097 = vrot.lane.b32.xlu0 %v4052_v22, %s3742_s5 }
 0x3fb   : > { %1099 = vrot.lane.b32.xlu1 %v4076_v38, %s3742_s5 }
 0x3fc   : > { %1101 = vrot.lane.b32.xlu0 %v4064_v30, %s3742_s5 }
 0x3ff   : > { %1103 = vrot.lane.b32.xlu1 %v4088_v50, %s3742_s5  ;;  %s3211_s5 = sshll.u32 %s3717_s24, 8  ;;  %s2948_s24 = scalar_lea.sflag [#allocation6], %s3963_s21 }
 0x457   : > { %v2057_v5 = vpop.xlane.xlu0 %2056 }
 0x458   : > { %v2079_v7 = vsub.f32 %v1891_v45, %v2057_v5 }
 0x45a   : > { %v2087_v8 = vmul.f32 1.442695, %v2079_v7 }
 0x45b   : > { %v2063_v9 = vpop.xlane.xlu0 %2062  ;;  %v2060_v11 = vpop.xlane.xlu1 %2059 }
 0x45c   : > { %3489 = vpow2.f32 %v2087_v8  ;;  %v2081_v6 = vsub.f32 %v1943_v46, %v2063_v9  ;;  %v2080_v23 = vsub.f32 %v1894_v49, %v2060_v11 }
 0x45e   : > { %v2091_v12 = vmul.f32 1.442695, %v2081_v6  ;;  %v2089_v3 = vmul.f32 1.442695, %v2080_v23 }
 0x45f   : > { %v2066_v13 = vpop.xlane.xlu0 %2065 }
 0x460   : > { %3491 = vpow2.f32 %v2091_v12  ;;  %v2082_v28 = vsub.f32 %v1946_v51, %v2066_v13 }
 0x461   : > { %3493 = vpow2.f32 %v2089_v3 }
 0x462   : > { %v2093_v22 = vmul.f32 1.442695, %v2082_v28 }
 0x463   : > { %v2069_v38 = vpop.xlane.xlu0 %2068  ;;  %v2072_v15 = vpop.xlane.xlu1 %2071 }
 0x464   : > { %3495 = vpow2.f32 %v2093_v22  ;;  %v2083_v30 = vsub.f32 %v1995_v56, %v2069_v38  ;;  %v2084_v50 = vsub.f32 %v1998_v61, %v2072_v15 }
 0x466   : > { %v2095_v14 = vmul.f32 1.442695, %v2083_v30  ;;  %v2097_v17 = vmul.f32 1.442695, %v2084_v50 }
 0x467   : > { %v2075_v18 = vpop.xlane.xlu0 %2074  ;;  %v2078_v19 = vpop.xlane.xlu1 %2077 }
 0x468   : > { %3497 = vpow2.f32 %v2095_v14  ;;  %v2085_v20 = vsub.f32 %v2047_v57, %v2075_v18  ;;  %v2086_v10 = vsub.f32 %v2050_v62, %v2078_v19 }
 0x469   : > { %v4204_v21 = vpop.eup %3489  ;;  %3499 = vpow2.f32 %v2097_v17 }
 0x46a   : > { %v2099_v24 = vmul.f32 1.442695, %v2085_v20  ;;  %v2101_v26 = vmul.f32 1.442695, %v2086_v10  ;;  %v2103_v27 = vsel %vm2054_vm4, %v4204_v21, 0.0 }
 0x46b   : > { %2104 = vadd.xlane.f32.xlu0 %v2103_v27  ;;  %v1090_v31 = vpop.permute.xlu0 %1089  ;;  %v1092_v32 = vpop.permute.xlu1 %1091 }
 0x46c   : > { %3501 = vpow2.f32 %v2099_v24 }
 0x46d   : > { %v4208_v34 = vpop.eup %3491  ;;  %3503 = vpow2.f32 %v2101_v26 }
 0x46e   : > { %v4210_v35 = vpop.eup %3493  ;;  %v2109_v36 = vsel %vm2054_vm4, %v4208_v34, 0.0 }
 0x46f   : > { %2110 = vadd.xlane.f32.xlu0 %v2109_v36  ;;  %v1098_v37 = vpop.permute.xlu0 %1097  ;;  %v2106_v40 = vsel %vm2054_vm4, %v4210_v35, 0.0  ;;  %v1094_v41 = vpop.permute.xlu1 %1093 }
 0x470   : > { %2107 = vadd.xlane.f32.xlu1 %v2106_v40  ;;  %v1113_v43 = vcombine.low %v1090_v31, %v1098_v37  ;;  %v1114_v44 = vcombine.high %v1090_v31, %v1098_v37 }
 0x471   : > { %v4216_v42 = vpop.eup %3495 }
 0x472   : > { %v2112_v45 = vsel %vm2054_vm4, %v4216_v42, 0.0  ;;  %v1121_v51 = vrot.slane %v1113_v43, %v4056_v25  ;;  %v1128_v53 = vrot.slane %v1114_v44, %v4056_v25 }
 0x473   : > { %2113 = vadd.xlane.f32.xlu0 %v2112_v45  ;;  %v1102_v46 = vpop.permute.xlu0 %1101  ;;  %v1096_v47 = vpop.permute.xlu1 %1095 }
 0x474   : > { %v1129_v48 = vcombine.low %v1094_v41, %v1102_v46  ;;  %v1130_v16 = vcombine.high %v1094_v41, %v1102_v46 }
 0x475   : > { %v4220_v49 = vpop.eup %3497 }
 0x476   : > { %v4223_v52 = vpop.eup %3499  ;;  %v1137_v54 = vrot.slane %v1129_v48, %v4056_v25  ;;  %v1144_v55 = vrot.slane %v1130_v16, %v4056_v25  ;;  %v2115_v56 = vsel %vm2054_vm4, %v4220_v49, 0.0 }
 0x477   : > { %2116 = vadd.xlane.f32.xlu0 %v2115_v56  ;;  %v2118_v57 = vsel %vm2054_vm4, %v4223_v52, 0.0  ;;  %v1100_v58 = vpop.permute.xlu1 %1099 }
 0x478   : > { %v1145_v59 = vcombine.low %v1121_v51, %v1137_v54  ;;  %v1146_v60 = vcombine.high %v1121_v51, %v1137_v54  ;;  %v1161_v61 = vcombine.low %v1128_v53, %v1144_v55  ;;  %v1162_v62 = vcombine.high %v1128_v53, %v1144_v55  ;;  %2119 = vadd.xlane.f32.xlu1 %v2118_v57 }
 0x479   : > { %v4232_v63 = vpop.eup %3501  ;;  %v1181_v5 = vcombine.low %v1092_v32, %v1100_v58  ;;  %v1182_v7 = vcombine.high %v1092_v32, %v1100_v58 }
 0x47a   : > { %v4234_v0 = vpop.eup %3503  ;;  %v1153_v1 = vrot.slane %v1145_v59, %v4070_v33  ;;  %v1160_v2 = vrot.slane %v1146_v60, %v4070_v33  ;;  %v1169_v39 = vrot.slane %v1161_v61, %v4070_v33  ;;  %v1176_v4 = vrot.slane %v1162_v62, %v4070_v33 }
 0x47b   : > { %v2121_v8 = vsel %vm2054_vm4, %v4232_v63, 0.0  ;;  %v2124_v9 = vsel %vm2054_vm4, %v4234_v0, 0.0  ;;  %v1104_v11 = vpop.permute.xlu1 %1103  ;;  %v1189_v50 = vrot.slane %v1181_v5, %v4056_v25  ;;  %v1196_v14 = vrot.slane %v1182_v7, %v4056_v25 }
 0x47c   : > { %v1249_v6 = vcombine.low %v1153_v1, %v1160_v2  ;;  %v3130_v23 = vcombine.high %v1153_v1, %v1160_v2  ;;  %v1265_v12 = vcombine.low %v1169_v39, %v1176_v4  ;;  %v3131_v3 = vcombine.high %v1169_v39, %v1176_v4  ;;  %2122 = vadd.xlane.f32.xlu0 %v2121_v8 }
 0x47d   : > { %2125 = vadd.xlane.f32.xlu1 %v2124_v9  ;;  %v1197_v13 = vcombine.low %v1096_v47, %v1104_v11  ;;  %v1198_v28 = vcombine.high %v1096_v47, %v1104_v11 }
 0x47e   : > { %v1256_v22 = vrot.slane %v1249_v6, %v4056_v25  ;;  %v1264_v38 = vrot.slane %v3130_v23, %v4056_v25  ;;  %v1272_v15 = vrot.slane %v1265_v12, %v4056_v25  ;;  %v1280_v30 = vrot.slane %v3131_v3, %v4056_v25 }
 0x47f   : > { %v1205_v17 = vrot.slane %v1197_v13, %v4056_v25  ;;  %v1212_v18 = vrot.slane %v1198_v28, %v4056_v25 }
 0x480   : > { %v1281_v19 = vcombine.low %v1256_v22, %v1264_v38  ;;  %v1282_v20 = vcombine.high %v1256_v22, %v1264_v38  ;;  %v1297_v10 = vcombine.low %v1272_v15, %v1280_v30  ;;  %v1298_v24 = vcombine.high %v1272_v15, %v1280_v30 }
 0x481   : > { %v1213_v26 = vcombine.low %v1189_v50, %v1205_v17  ;;  %v1214_v27 = vcombine.high %v1189_v50, %v1205_v17  ;;  %v1229_v31 = vcombine.low %v1196_v14, %v1212_v18  ;;  %v1230_v32 = vcombine.high %v1196_v14, %v1212_v18 }
 0x482   : > { %v1289_v36 = vrot.slane %v1281_v19, %v4070_v33  ;;  %v1296_v37 = vrot.slane %v1282_v20, %v4070_v33  ;;  %v1305_v40 = vrot.slane %v1297_v10, %v4070_v33  ;;  %v1312_v41 = vrot.slane %v1298_v24, %v4070_v33 }
 0x483   : > { %v1221_v43 = vrot.slane %v1213_v26, %v4070_v33  ;;  %v1228_v44 = vrot.slane %v1214_v27, %v4070_v33  ;;  %v1237_v45 = vrot.slane %v1229_v31, %v4070_v33  ;;  %v1244_v46 = vrot.slane %v1230_v32, %v4070_v33 }
 0x484   : > { %v1313_v47 = vcombine.low %v1289_v36, %v1305_v40  ;;  %v1314_v48 = vcombine.high %v1289_v36, %v1305_v40  ;;  %v1315_v16 = vcombine.low %v1296_v37, %v1312_v41  ;;  %v1316_v51 = vcombine.high %v1296_v37, %v1312_v41 }
 0x485   : > { %v1317_v53 = vcombine.low %v1221_v43, %v1228_v44  ;;  %v3132_v54 = vcombine.high %v1221_v43, %v1228_v44  ;;  %v1333_v55 = vcombine.low %v1237_v45, %v1244_v46  ;;  %v3133_v56 = vcombine.high %v1237_v45, %v1244_v46 }
 0x486   : > { %v3203_v57 = vpack.c.bf16 %v1313_v47, %v1313_v47  ;;  %v3205_v58 = vpack.c.bf16 %v1314_v48, %v1314_v48  ;;  %v3207_v59 = vpack.c.bf16 %v1315_v16, %v1315_v16  ;;  %v3209_v60 = vpack.c.bf16 %v1316_v51, %v1316_v51 }
 0x487   : > { %v1324_v61 = vrot.slane %v1317_v53, %v4056_v25  ;;  %v1332_v62 = vrot.slane %v3132_v54, %v4056_v25  ;;  %v1340_v1 = vrot.slane %v1333_v55, %v4056_v25  ;;  %v1348_v2 = vrot.slane %v3133_v56, %v4056_v25 }
 0x488   : > { %1417 = vst.msk [vmem:[#allocation3] sm:$0xf] %vm1080_vm2, %v3203_v57  ;;  %1419 = vst.msk [vmem:[#allocation3 + $0x8] sm:$0xf] %vm1080_vm2, %v3205_v58 }
 0x489   : > { %1421 = vst.msk [vmem:[#allocation3 + $0x10] sm:$0xf] %vm1080_vm2, %v3207_v59  ;;  %1423 = vst.msk [vmem:[#allocation3 + $0x18] sm:$0xf] %vm1080_vm2, %v3209_v60  ;;  %v1349_v39 = vcombine.low %v1324_v61, %v1332_v62  ;;  %v1350_v4 = vcombine.high %v1324_v61, %v1332_v62  ;;  %v1365_v5 = vcombine.low %v1340_v1, %v1348_v2 }
 0x48a   : > { %v1366_v7 = vcombine.high %v1340_v1, %v1348_v2 }
 0x48b   : > { %v1357_v8 = vrot.slane %v1349_v39, %v4070_v33  ;;  %v1364_v9 = vrot.slane %v1350_v4, %v4070_v33  ;;  %v1373_v11 = vrot.slane %v1365_v5, %v4070_v33 }
 0x48c   : > { %v1380_v6 = vrot.slane %v1366_v7, %v4070_v33 }
 0x48d   : > { %v1381_v23 = vcombine.low %v1357_v8, %v1373_v11  ;;  %v1382_v12 = vcombine.high %v1357_v8, %v1373_v11 }
 0x48e   : > { %v1383_v3 = vcombine.low %v1364_v9, %v1380_v6  ;;  %v1384_v13 = vcombine.high %v1364_v9, %v1380_v6 }
 0x48f   : > { %v3204_v28 = vpack.c.bf16 %v1381_v23, %v1381_v23  ;;  %v3206_v22 = vpack.c.bf16 %v1382_v12, %v1382_v12 }
 0x490   : > { %v3208_v38 = vpack.c.bf16 %v1383_v3, %v1383_v3  ;;  %v3210_v15 = vpack.c.bf16 %v1384_v13, %v1384_v13 }
 0x491   : > { %1418 = vst.msk [vmem:[#allocation3 + $0x4] sm:$0xf] %vm1080_vm2, %v3204_v28  ;;  %1420 = vst.msk [vmem:[#allocation3 + $0xc] sm:$0xf] %vm1080_vm2, %v3206_v22 }
 0x492   : > { %1422 = vst.msk [vmem:[#allocation3 + $0x14] sm:$0xf] %vm1080_vm2, %v3208_v38  ;;  %1424 = vst.msk [vmem:[#allocation3 + $0x1c] sm:$0xf] %vm1080_vm2, %v3210_v15 }
 0x498   : > { %v3469_v30 = vld [vmem:[#allocation3] sm:$0xff]   ;;  %v3470_v50 = vld [vmem:[#allocation3 + $0x8] sm:$0xff]  }
 0x499   : > { %3286 = vmatpush3.bf16.msra.mxu0 %v3469_v30  ;;  %3292 = vmatpush3.bf16.msra.mxu1 %v3470_v50  ;;  %v3471_v43 = vld [vmem:[#allocation3 + $0x10] sm:$0xff]   ;;  %v3472_v48 = vld [vmem:[#allocation3 + $0x18] sm:$0xff]  }
 0x49a   : > { %3297 = vmatprep.subr.bf16.mxu0 %v3735_v29  ;;  %3303 = vmatprep.subr.bf16.mxu1 %v3735_v29 }
 0x4f4   : > { %v2105_v14 = vpop.xlane.xlu0 %2104 }
 0x4f5   : > { %3505 = vrcp.f32 %v2105_v14 }
 0x4f8   : > { %v2111_v17 = vpop.xlane.xlu0 %2110 }
 0x4f9   : > { %v2108_v18 = vpop.xlane.xlu1 %2107 }
 0x4fa   : > { %3507 = vrcp.f32 %v2108_v18 }
 0x4fb   : > { %3509 = vrcp.f32 %v2111_v17 }
 0x4fc   : > { %v2114_v19 = vpop.xlane.xlu0 %2113 }
 0x4fd   : > { %3511 = vrcp.f32 %v2114_v19 }
 0x500   : > { %v2117_v20 = vpop.xlane.xlu0 %2116 }
 0x501   : > { %3513 = vrcp.f32 %v2117_v20  ;;  %v2120_v10 = vpop.xlane.xlu1 %2119 }
 0x502   : > { %3515 = vrcp.f32 %v2120_v10  ;;  %v3506_v24 = vpop.eup %3505 }
 0x503   : > { %v2135_v36 = vmul.f32 %v3506_v24, %v4204_v21 }
 0x505   : > { %v2123_v26 = vpop.xlane.xlu0 %2122 }
 0x506   : > { %3517 = vrcp.f32 %v2123_v26  ;;  %v2126_v27 = vpop.xlane.xlu1 %2125 }
 0x507   : > { %v3508_v31 = vpop.eup %3507  ;;  %3519 = vrcp.f32 %v2126_v27 }
 0x508   : > { %v3510_v32 = vpop.eup %3509  ;;  %v2136_v37 = vmul.f32 %v3508_v31, %v4210_v35 }
 0x509   : > { %v2137_v44 = vmul.f32 %v3510_v32, %v4208_v34 }
 0x50a   : > { %v3512_v40 = vpop.eup %3511  ;;  %v2143_v41 = vpack.c.bf16 %v2136_v37, %v2135_v36 }
 0x50b   : > { %v2138_v45 = vmul.f32 %v3512_v40, %v4216_v42 }
 0x50c   : > { %3288 = vmatmul.mubr.msk.bf16.vlgmr.msra.gmra.mxu0 %vm2054_vm4, %v2143_v41 }
 0x50d   : > { %3298 = vmatpush3.bf16.msra.mxu0 %v3471_v43  ;;  %v2144_v46 = vpack.c.bf16 %v2138_v45, %v2137_v44  ;;  %3299 = vmatprep.mubr.msk.bf16.mxu0 %vm3736_vm1, %v3735_v29 }
 0x50e   : > { %v3514_v47 = vpop.eup %3513  ;;  %3309 = vmatprep.subr.bf16.mxu0 %v3735_v29 }
 0x50f   : > { %v3516_v21 = vpop.eup %3515  ;;  %3294 = vmatmul.mubr.msk.bf16.vlgmr.msra.gmra.mxu1 %vm2054_vm4, %v2144_v46  ;;  %v2139_v35 = vmul.f32 %v3514_v47, %v4220_v49 }
 0x510   : > { %3304 = vmatpush3.bf16.msra.mxu1 %v3472_v48  ;;  %v2140_v34 = vmul.f32 %v3516_v21, %v4223_v52  ;;  %3305 = vmatprep.mubr.msk.bf16.mxu1 %vm3736_vm1, %v3735_v29 }
 0x511   : > { %3317 = vmatprep.subr.bf16.mxu1 %v3735_v29 }
 0x512   : > { %v2145_v42 = vpack.c.bf16 %v2140_v34, %v2139_v35 }
 0x513   : > { %v3518_v16 = vpop.eup %3517 }
 0x514   : > { %v3520_v51 = vpop.eup %3519  ;;  %3300 = vmatmul.mubr.msk.bf16.vlgmr.msra.gmra.mxu0 %vm2054_vm4, %v2145_v42  ;;  %v2141_v53 = vmul.f32 %v3518_v16, %v4232_v63 }
 0x515   : > { %v2142_v54 = vmul.f32 %v3520_v51, %v4234_v0  ;;  %3313 = vmatprep.mubr.msk.bf16.mxu0 %vm3736_vm1, %v3735_v29 }
 0x517   : > { %v2146_v49 = vpack.c.bf16 %v2142_v54, %v2141_v53 }
 0x519   : > { %3306 = vmatmul.mubr.msk.bf16.vlgmr.msra.gmra.mxu1 %vm2054_vm4, %v2146_v49 }
 0x51a   : > { %3321 = vmatprep.mubr.msk.bf16.mxu1 %vm3736_vm1, %v3735_v29 }
 0x5cc   : > { %v2198_v52 = vpop.f32.mrf.mxu0 }
 0x5ce   : > { %v3289_v55 = vpop.f32.mrf.mxu0 }
 0x5cf   : > { %v2248_v56 = vpop.f32.mrf.mxu1 }
 0x5d0   : > { %v2201_v57 = vpop.f32.mrf.mxu0 }
 0x5d1   : > { %v3295_v58 = vpop.f32.mrf.mxu1 }
 0x5d2   : > { %v3290_v59 = vpop.f32.mrf.mxu0 }
 0x5d3   : > { %v2251_v60 = vpop.f32.mrf.mxu1  ;;  %v3473_v59 = vld [vmem:[#allocation9 + $0x8] sm:$0xff]  }
 0x5d4   : > { %v2298_v61 = vpop.f32.mrf.mxu0  ;;  %3310 = vmatpush3.bf16.msra.mxu0 %v3473_v59 }
 0x5d5   : > { %v3296_v63 = vpop.f32.mrf.mxu1  ;;  %v2355_v0 = vcombine.low %v2198_v52, %v2298_v61  ;;  %v2356_v1 = vcombine.high %v2198_v52, %v2298_v61  ;;  %3311 = vmatprep.subr.bf16.mxu0 %v3735_v29 }
 0x5d6   : > { %v3301_v62 = vpop.f32.mrf.mxu0 }
 0x5d7   : > { %v2363_v9 = vrot.slane %v2355_v0, %v4056_v25  ;;  %v2370_v11 = vrot.slane %v2356_v1, %v4056_v25 }
 0x5d8   : > { %v2301_v2 = vpop.f32.mrf.mxu0 }
 0x5d9   : > { %v2348_v39 = vpop.f32.mrf.mxu1  ;;  %v2423_v12 = vcombine.low %v2201_v57, %v2301_v2  ;;  %v2424_v3 = vcombine.high %v2201_v57, %v2301_v2 }
 0x5da   : > { %v2371_v4 = vcombine.low %v2248_v56, %v2348_v39  ;;  %v2372_v5 = vcombine.high %v2248_v56, %v2348_v39  ;;  %v3302_v7 = vpop.f32.mrf.mxu0 }
 0x5db   : > { %v3307_v8 = vpop.f32.mrf.mxu1  ;;  %v2431_v10 = vrot.slane %v2423_v12, %v4056_v25  ;;  %v2438_v24 = vrot.slane %v2424_v3, %v4056_v25 }
 0x5dc   : > { %v2379_v6 = vrot.slane %v2371_v4, %v4056_v25  ;;  %v2386_v23 = vrot.slane %v2372_v5, %v4056_v25  ;;  %v3474_v8 = vld [vmem:[#allocation9] sm:$0xff]  }
 0x5dd   : > { %v2351_v13 = vpop.f32.mrf.mxu1  ;;  %3312 = vmatpush3.bf16.msra.mxu0 %v3474_v8 }
 0x5de   : > { %v2387_v28 = vcombine.low %v2363_v9, %v2379_v6  ;;  %v2388_v22 = vcombine.high %v2363_v9, %v2379_v6  ;;  %v2403_v38 = vcombine.low %v2370_v11, %v2386_v23  ;;  %v2404_v15 = vcombine.high %v2370_v11, %v2386_v23  ;;  %3325 = vmatprep.subr.bf16.mxu0 %v3735_v29 }
 0x5df   : > { %v2439_v30 = vcombine.low %v2251_v60, %v2351_v13  ;;  %v2440_v50 = vcombine.high %v2251_v60, %v2351_v13  ;;  %v3308_v14 = vpop.f32.mrf.mxu1 }
 0x5e0   : > { %v2395_v17 = vrot.slane %v2387_v28, %v4070_v33  ;;  %v2402_v18 = vrot.slane %v2388_v22, %v4070_v33  ;;  %v2411_v19 = vrot.slane %v2403_v38, %v4070_v33  ;;  %v2418_v20 = vrot.slane %v2404_v15, %v4070_v33 }
 0x5e1   : > { %v2447_v26 = vrot.slane %v2439_v30, %v4056_v25  ;;  %v2454_v27 = vrot.slane %v2440_v50, %v4056_v25 }
 0x5e2   : > { %v2491_v31 = vcombine.low %v2395_v17, %v2402_v18  ;;  %v3168_v32 = vcombine.high %v2395_v17, %v2402_v18  ;;  %v2507_v36 = vcombine.low %v2411_v19, %v2418_v20  ;;  %v3169_v37 = vcombine.high %v2411_v19, %v2418_v20 }
 0x5e3   : > { %v2455_v40 = vcombine.low %v2431_v10, %v2447_v26  ;;  %v2456_v41 = vcombine.high %v2431_v10, %v2447_v26  ;;  %v2471_v43 = vcombine.low %v2438_v24, %v2454_v27  ;;  %v2472_v44 = vcombine.high %v2438_v24, %v2454_v27 }
 0x5e4   : > { %v2498_v45 = vrot.slane %v2491_v31, %v4056_v25  ;;  %v2506_v46 = vrot.slane %v3168_v32, %v4056_v25  ;;  %v2514_v47 = vrot.slane %v2507_v36, %v4056_v25  ;;  %v2522_v48 = vrot.slane %v3169_v37, %v4056_v25 }
 0x5e5   : > { %v2463_v21 = vrot.slane %v2455_v40, %v4070_v33  ;;  %v2470_v35 = vrot.slane %v2456_v41, %v4070_v33  ;;  %v2479_v34 = vrot.slane %v2471_v43, %v4070_v33  ;;  %v2486_v42 = vrot.slane %v2472_v44, %v4070_v33  ;;  %v3172_v43 = vld [vmem:[%s4460_s11] ss:$0 sm:$0xff] }
 0x5e6   : > { %v2524_v16 = vcombine.high %v2498_v45, %v2506_v46  ;;  %v2540_v51 = vcombine.high %v2514_v47, %v2522_v48  ;;  %v2523_v53 = vcombine.low %v2498_v45, %v2506_v46  ;;  %v2539_v54 = vcombine.low %v2514_v47, %v2522_v48  ;;  %v3529_v47 = vld [vmem:[%s3986_s30] sm:$0xff] }
 0x5e7   : > { %v2559_v49 = vcombine.low %v2463_v21, %v2470_v35  ;;  %v3170_v52 = vcombine.high %v2463_v21, %v2470_v35  ;;  %v2575_v55 = vcombine.low %v2479_v34, %v2486_v42  ;;  %v3171_v56 = vcombine.high %v2479_v34, %v2486_v42 }
 0x5e8   : > { %v2531_v57 = vrot.slane %v2523_v53, %v4070_v33  ;;  %v2547_v58 = vrot.slane %v2539_v54, %v4070_v33  ;;  %v2538_v0 = vrot.slane %v2524_v16, %v4070_v33  ;;  %v2554_v1 = vrot.slane %v2540_v51, %v4070_v33  ;;  %v3530_v16 = vld [vmem:[%s3986_s30 + $0x8] sm:$0xff]  ;;  %s4506_s30 = sld [smem:[#allocation28_spill]] }
 0x5e9   : > { %v2566_v60 = vrot.slane %v2559_v49, %v4056_v25  ;;  %v2574_v61 = vrot.slane %v3170_v52, %v4056_v25  ;;  %v2582_v63 = vrot.slane %v2575_v55, %v4056_v25  ;;  %v2590_v62 = vrot.slane %v3171_v56, %v4056_v25 }
 0x5ea   : > { %v2555_v2 = vcombine.low %v2531_v57, %v2547_v58  ;;  %v2557_v23 = vcombine.low %v2538_v0, %v2554_v1  ;;  %v2556_v3 = vcombine.high %v2531_v57, %v2547_v58  ;;  %v2558_v30 = vcombine.high %v2538_v0, %v2554_v1 }
 0x5eb   : > { %v2592_v39 = vcombine.high %v2566_v60, %v2574_v61  ;;  %v2608_v4 = vcombine.high %v2582_v63, %v2590_v62  ;;  %v2591_v5 = vcombine.low %v2566_v60, %v2574_v61  ;;  %v2607_v7 = vcombine.low %v2582_v63, %v2590_v62  ;;  %v3475_v63 = vld [vmem:[#allocation10 + $0x8] sm:$0xff]   ;;  %v3476_v62 = vld [vmem:[#allocation10] sm:$0xff]  }
 0x5ec   : > { %3318 = vmatpush3.bf16.msra.mxu1 %v3475_v63 }
 0x5ed   : > { %v2606_v9 = vrot.slane %v2592_v39, %v4070_v33  ;;  %v2622_v11 = vrot.slane %v2608_v4, %v4070_v33  ;;  %v2599_v6 = vrot.slane %v2591_v5, %v4070_v33  ;;  %v2615_v25 = vrot.slane %v2607_v7, %v4070_v33  ;;  %3319 = vmatprep.subr.bf16.mxu1 %v3735_v29 }
 0x5ee   : > { %s4396_s8 = scalar_lea.hbm %s4506_s30, %s3211_s5 }
 0x5ef   : > { %v2625_v12 = vcombine.low %v2606_v9, %v2622_v11  ;;  %v2624_v13 = vcombine.high %v2599_v6, %v2615_v25  ;;  %v2623_v28 = vcombine.low %v2599_v6, %v2615_v25  ;;  %v2626_v15 = vcombine.high %v2606_v9, %v2622_v11  ;;  %v3176_v9 = vld [vmem:[%s4453_s4] ss:$0 sm:$0xff] }
 0x5f0   : > { %3320 = vmatpush3.bf16.msra.mxu1 %v3476_v62 }
 0x5f1   : > { %v3451_v22 = vpack.i.bf16 %v2625_v12, %v2557_v23  ;;  %v3446_v38 = vpack.i.bf16 %v2624_v13, %v2556_v3  ;;  %v3456_v50 = vpack.i.bf16 %v2626_v15, %v2558_v30  ;;  %v3177_v23 = vld [vmem:[%s4502_s0] ss:$0 sm:$0xff]  ;;  %v3479_v15 = vld [vmem:[%s4503_s15 + $0x8] sm:$0xff]  }
 0x5f2   : > { %v3480_v30 = vld [vmem:[%s4503_s15] sm:$0xff]  }
 0x5f3   : > { %3452 = vrot.lane.b32.xlu1 %v3451_v22, %s3743_s19  ;;  %3447 = vrot.lane.b32.xlu0 %v3446_v38, %s3744_s16  ;;  %v3477_v22 = vld [vmem:[%s4503_s15 + $0x18] sm:$0xff]   ;;  %v3478_v38 = vld [vmem:[%s4503_s15 + $0x10] sm:$0xff]   ;;  %s623_s19 = scalar_lea.vmem [#allocation12], %s3105_s17 }
 0x5f7   : > { %3457 = vrot.lane.b32.xlu1 %v3456_v50, %s3745_s13  ;;  %v3178_v50 = vld [vmem:[%s4504_s12] ss:$0 sm:$0xff]  ;;  %s2963_s13 = sshll.u32 %s623_s19, 4  ;;  %s3641_s12 = sshll.u32 %s3746_s10, 4  ;;  %s4399_s13 = int_to_ptr.vmem [resolvable:$true] %s2963_s13  ;;  %s3642_s12 = int_to_ptr.vmem [resolvable:$false] %s3641_s12 }
 0x5f8   : > { %s3637_s17 = scalar_lea.vmem %s4399_s13, 256  ;;  %s3643_s0 = scalar_lea.vmem %s3642_s12, 512 }
 0x5f9   : > { %p3638_p2 = scmp.ne.s32.totalorder %s4399_s13, %s3637_s17  ;;  %p3644_p6 = scmp.lt.s32.totalorder %s4399_s13, %s3642_s12 }
 0x5fa   : > { %p3645_p9 = scmp.lt.s32.totalorder %s3643_s0, %s3637_s17 }
 0x5fb   : > { %p3639_p11 = pnand %p3638_p2, %p3933_p0 }
 0x5fc   : > { %p3646_p13 = por %p3645_p9, %p3644_p6 }
 0x5fd   : > { %p3640_p7 = pneg %p3639_p11 }
 0x5ff   : > { %p3647_p1 = pnand %p3646_p13, %p3640_p7 }
 0x665   : > { %v3453_v33 = vpop.permute.xlu1 %3452  ;;  %v3448_v14 = vpop.permute.xlu0 %3447 }
 0x666   : > { %v3450_v17 = vunpack.i.h.bf16 %v3448_v14  ;;  %v3449_v18 = vunpack.i.l.bf16 %v3448_v14  ;;  %v3455_v19 = vunpack.i.h.bf16 %v3453_v33  ;;  %v3454_v20 = vunpack.i.l.bf16 %v3453_v33 }
 0x668   : > { %v2651_v10 = vsel %vm1850_vm3, %v2555_v2, %v3449_v18  ;;  %v2652_v24 = vsel %vm1850_vm3, %v2623_v28, %v3450_v17 }
 0x669   : > { %v3458_v26 = vpop.permute.xlu1 %3457  ;;  %v2653_v32 = vsel %vm2054_vm4, %v2651_v10, %v3454_v20  ;;  %v2654_v36 = vsel %vm2054_vm4, %v2652_v24, %v3455_v19 }
 0x66a   : > { %v3460_v27 = vunpack.i.h.bf16 %v3458_v26  ;;  %v3459_v31 = vunpack.i.l.bf16 %v3458_v26 }
 0x66c   : > { %v2656_v37 = vsel %vm2655_vm5, %v2653_v32, %v3459_v31  ;;  %v2657_v40 = vsel %vm2655_vm5, %v2654_v36, %v3460_v27 }
 0x66d   : > { %v2658_v41 = vpack.c.bf16 %v2657_v40, %v2656_v37 }
 0x66f   : > { %3314 = vmatmul.mubr.msk.bf16.vlgmr.msra.gmra.mxu0 %vm644_vm0, %v2658_v41 }
 0x670   : > { %3333 = vmatprep.mubr.msk.bf16.mxu0 %vm3736_vm1, %v3735_v29  ;;  %3326 = vmatpush3.bf16.msra.mxu0 %v3477_v22 }
 0x671   : > { %3327 = vmatprep.subr.bf16.mxu0 %v3735_v29 }
 0x674   : > { %3328 = vmatpush3.bf16.msra.mxu0 %v3478_v38 }
 0x675   : > { %3329 = vmatprep.subr.bf16.mxu0 %v3735_v29 }
 0x678   : > { %3330 = vmatpush3.bf16.msra.mxu0 %v3479_v15 }
 0x679   : > { %3331 = vmatprep.subr.bf16.mxu0 %v3735_v29 }
 0x67c   : > { %3332 = vmatpush3.bf16.msra.mxu0 %v3480_v30 }
 0x72f   : > { %v2719_v44 = vpop.f32.mrf.mxu0 }
 0x730   : > { %v2720_v45 = vadd.f32 %v3172_v43, %v2719_v44 }
 0x731   : > { %v3315_v46 = vpop.f32.mrf.mxu0 }
 0x732   : > { %v4346_v48 = vadd.f32 %v3529_v47, %v2720_v45 }
 0x733   : > { %v2722_v21 = vpop.f32.mrf.mxu0 }
 0x734   : > { %v2723_v35 = vadd.f32 %v3172_v43, %v2722_v21  ;;  %v2730_v34 = vsel %vm644_vm0, %v4346_v48, 0.0 }
 0x735   : > { %2731 = vadd.xlane.f32.xlu1 %v2730_v34  ;;  %v3316_v42 = vpop.f32.mrf.mxu0 }
 0x736   : > { %v4351_v51 = vadd.f32 %v3530_v16, %v2723_v35  ;;  %v3182_v42 = vld [vmem:[%s4505_s29] ss:$0 sm:$0xff] }
 0x738   : > { %v2733_v53 = vsel %vm644_vm0, %v4351_v51, 0.0 }
 0x739   : > { %2734 = vadd.xlane.f32.xlu0 %v2733_v53 }
 0x7be   : > { %v2732_v54 = vpop.xlane.xlu1 %2731 }
 0x7bf   : > { %v2736_v49 = vmul.f32 0.03125, %v2732_v54 }
 0x7c1   : > { %v2738_v52 = vsub.f32 %v4346_v48, %v2736_v49 }
 0x7c2   : > { %v2735_v55 = vpop.xlane.xlu0 %2734 }
 0x7c3   : > { %v2737_v56 = vmul.f32 0.03125, %v2735_v55  ;;  %v2740_v57 = vmul.f32 %v2738_v52, %v2738_v52 }
 0x7c5   : > { %v2739_v58 = vsub.f32 %v4351_v51, %v2737_v56  ;;  %v2742_v59 = vsel %vm644_vm0, %v2740_v57, 0.0 }
 0x7c6   : > { %2743 = vadd.xlane.f32.xlu0 %v2742_v59 }
 0x7c7   : > { %v2741_v60 = vmul.f32 %v2739_v58, %v2739_v58 }
 0x7c9   : > { %v2745_v61 = vsel %vm644_vm0, %v2741_v60, 0.0 }
 0x7ca   : > { %2746 = vadd.xlane.f32.xlu0 %v2745_v61 }
 0x84f   : > { %v2744_v0 = vpop.xlane.xlu0 %2743 }
 0x850   : > { %v2748_v1 = vmul.f32 0.03125, %v2744_v0 }
 0x852   : > { %v2750_v2 = vadd.f32 1e-06, %v2748_v1 }
 0x853   : > { %v2747_v39 = vpop.xlane.xlu0 %2746 }
 0x854   : > { %3521 = vrsqrt.f32 %v2750_v2  ;;  %v2749_v4 = vmul.f32 0.03125, %v2747_v39 }
 0x856   : > { %v2751_v5 = vadd.f32 1e-06, %v2749_v4 }
 0x858   : > { %3523 = vrsqrt.f32 %v2751_v5 }
 0x861   : > { %v3522_v7 = vpop.eup %3521 }
 0x862   : > { %v2754_v8 = vmul.f32 %v3522_v7, %v2738_v52 }
 0x864   : > { %v2762_v25 = vmul.f32 %v3176_v9, %v2754_v8 }
 0x865   : > { %v3524_v11 = vpop.eup %3523 }
 0x866   : > { %v2755_v6 = vmul.f32 %v3524_v11, %v2739_v58  ;;  %v2770_v3 = vadd.f32 %v3177_v23, %v2762_v25 }
 0x868   : > { %v2763_v12 = vmul.f32 %v3176_v9, %v2755_v6 }
 0x86a   : > { %v2771_v13 = vadd.f32 %v3177_v23, %v2763_v12 }
 0x86c   : > { %v2772_v28 = vpack.c.bf16 %v2771_v13, %v2770_v3 }
 0x86e   : > { %3322 = vmatmul.mubr.msk.bf16.vlgmr.msra.gmra.mxu1 %vm644_vm0, %v2772_v28 }
 0x92e   : > { %v2833_v33 = vpop.f32.mrf.mxu1 }
 0x92f   : > { %v2834_v14 = vadd.f32 %v3178_v50, %v2833_v33 }
 0x930   : > { %v3323_v17 = vpop.f32.mrf.mxu1 }
 0x931   : > { %v2840_v18 = vmul.f32 %v2834_v14, %v2834_v14 }
 0x932   : > { %v2836_v19 = vpop.f32.mrf.mxu1 }
 0x933   : > { %v2842_v20 = vmul.f32 %v2840_v18, %v2834_v14  ;;  %v2837_v10 = vadd.f32 %v3178_v50, %v2836_v19 }
 0x934   : > { %v3324_v24 = vpop.f32.mrf.mxu1 }
 0x935   : > { %v2844_v26 = vmul.f32 0.044715, %v2842_v20  ;;  %v2841_v27 = vmul.f32 %v2837_v10, %v2837_v10 }
 0x937   : > { %v2846_v29 = vadd.f32 %v2844_v26, %v2834_v14  ;;  %v2843_v31 = vmul.f32 %v2841_v27, %v2837_v10 }
 0x939   : > { %v2848_v32 = vmul.f32 0.7978846, %v2846_v29  ;;  %v2845_v36 = vmul.f32 0.044715, %v2843_v31 }
 0x93b   : > { %3525 = vtanh.f32 %v2848_v32  ;;  %v2847_v37 = vadd.f32 %v2845_v36, %v2837_v10 }
 0x93d   : > { %v2849_v40 = vmul.f32 0.7978846, %v2847_v37 }
 0x93f   : > { %3527 = vtanh.f32 %v2849_v40 }
 0x948   : > { %v3526_v41 = vpop.eup %3525 }
 0x949   : > { %v2852_v43 = vadd.f32 1.0, %v3526_v41 }
 0x94b   : > { %v2854_v45 = vmul.f32 0.5, %v2852_v43 }
 0x94c   : > { %v3528_v44 = vpop.eup %3527 }
 0x94d   : > { %v2853_v46 = vadd.f32 1.0, %v3528_v44  ;;  %v2856_v21 = vmul.f32 %v2854_v45, %v2834_v14 }
 0x94f   : > { %v2855_v47 = vmul.f32 0.5, %v2853_v46 }
 0x951   : > { %v2857_v35 = vmul.f32 %v2855_v47, %v2837_v10 }
 0x953   : > { %v2858_v34 = vpack.c.bf16 %v2857_v35, %v2856_v21 }
 0x955   : > { %3334 = vmatmul.mubr.msk.bf16.vlgmr.msra.gmra.mxu0 %vm2898_vm6, %v2858_v34 }
 0xa15   : > { %v2936_v16 = vpop.f32.mrf.mxu0 }
 0xa16   : > { %v2937_v53 = vadd.f32 %v3182_v42, %v2936_v16 }
 0xa17   : > { %v3335_v54 = vpop.f32.mrf.mxu0 }
 0xa18   : > { %v2943_v49 = vadd.f32 %v2937_v53, %v4346_v48 }
 0xa19   : > { %v2939_v52 = vpop.f32.mrf.mxu0 }
 0xa1a   : > { %2945 = vst.msk [vmem:[%s623_s19] sm:$0xff] %vm644_vm0, %v2943_v49  ;;  %v2940_v55 = vadd.f32 %v3182_v42, %v2939_v52 }
 0xa1b   : > { %v3336_v56 = vpop.f32.mrf.mxu0 }
 0xa1c   : > { %v2944_v57 = vadd.f32 %v2940_v55, %v4351_v51 }
 0xa1e   : > { %2946 = vst.msk [vmem:[%s623_s19 + $0x8] sm:$0xff] %vm644_vm0, %v2944_v57 }
 0xa1f   : > { %3650 = shalt.err (!%p3647_p1)
}
 0xa20   : > { %s3651_s18 = scalar_lea.hbm %s4396_s8, 256  ;;  %s3655_s19 = scalar_lea.hbm %s4506_s30, 512 }
 0xa21   : > { %p3652_p4 = scmp.ne.s32.totalorder %s4396_s8, %s3651_s18  ;;  %p3656_p5 = scmp.lt.s32.totalorder %s4396_s8, %s4506_s30 }
 0xa22   : > { %p3657_p3 = scmp.lt.s32.totalorder %s3655_s19, %s3651_s18 }
 0xa23   : > { %p3653_p8 = pnand %p3652_p4, %p3933_p0 }
 0xa24   : > { %p3658_p10 = por %p3657_p3, %p3656_p5 }
 0xa25   : > { %p3654_p12 = pneg %p3653_p8 }
 0xa27   : > { %p3659_p2 = pnand %p3658_p10, %p3654_p12 }
 0xa29   : > { %3662 = shalt.err (!%p3659_p2)
}
 0xa2a   : > { %s3747_s17 = smov 128  }
 0xa2b   : > { %3351 = dma.vmem_to_hbm [thread:$0]  (%p3933_p0), %s4399_s13, 256, %s4396_s8, %s2948_s24, %s3747_s17, %s3747_s17, %s3744_s16  }
 0xa2c PF: > { %s4507_s10 = sld [smem:[#allocation17_spill]]  ;;  %p4510_p7 = scmp.ge.s32.totalorder %s3725_s26, 2 }
 0xa2d   : > { %s4508_s12 = sld [smem:[#allocation18_spill]] }
 0xa32   : > { %s2978_s0 = sand.u32 1, %s4507_s10  }
 0xa33   : > { %p4509_p11 = scmp.ne.s32.totalorder %s4508_s12, 0  ;;  %s2979_s18 = scalar_lea.sflag [#allocation6], %s2978_s0 }
 0xa35   : > { %p3368_p6 = pnand %p4510_p7, %p4509_p11 }
 0xa37   : > { %p3369_p9 = pneg %p3368_p6 }
 0xa39   : > { %3700 = dma.done.wait (%p3369_p9), %s2979_s18, 256  }
 0xa3a   : > { %3702 = vsyncadd (%p3369_p9), %s2979_s18, 4294967040  ;;  %s34_s26 = sadd.s32 1, %s3725_s26   ;;  %s4511_s27 = sld [smem:[#allocation19_spill]] }
 0xa3b   : > { %p31_p13 = scmp.ge.s32.totalorder %s34_s26, 4   ;;  %s4512_s21 = smov %s3709_s22 }
 0xa3c   : > { %s4513_s22 = smov %s3713_s23  ;;  %s4514_s23 = smov %s3945_s28 }
 0xa3d   : > { %s4515_s24 = smov %s3721_s25  ;;  %33 = sbr.rel (!%p31_p13) target bundleno = 18 (0x12), region = 148 }
 0xa40   : > { %s4516_s25 = smov %s4511_s27 }
 0xa42   :  { %2984 = vsyncpa [#allocation5], 1 }
 0xa43   :  { %2986 = vsyncpa [#allocation5 + $0x1], 1 }
 0xa44   :  { %2987 = vsyncpa [#allocation8], 1 }
 0xa45   :  { %2988 = vsyncpa [#allocation11], 1 }
 0xa46   :  { %2989 = vsyncpa [#allocation6], 1 }
 0xa47   :  { %2991 = vsyncpa [#allocation6 + $0x1], 1 }

</bundles_post_ra>
